<compile_context>
chip_gen: v6e
topology: v6e:2x2x1
jax: 0.10.0
libtpu: 0.0.40
codegen_flags: <defaults>
</compile_context>

<pallas_src>
import math
from functools import partial

import numpy as np
import jax
import jax.numpy as jnp
from jax.experimental import pallas as pl
from jax.experimental.pallas import tpu as pltpu

# ---------------- model hyper-parameters (the `params` object) ----------------
BATCH = 2          # batch size
C_IN = 4           # params.d_in[0]
SEQ = 8            # sequence length L
D_MODEL = 32       # params.model_dim
NHEAD = 4          # params.nhead
N_LAYERS = 2       # params.encoder_n_layers
D_FC_OUT = 32      # params.d_fc_out (must be divisible by 4: OutModule MHA heads)
OUT_NHEAD = 4      # nn.MultiheadAttention(hidden_dim, num_heads=4) is hard-coded
N_TARGETS = 1      # params.n_targets
KSIZE = 3          # conv kernel size
MAX_LEN = 512      # positional-encoding table length
LN_EPS = 1e-5

_VMEM = pl.BlockSpec(memory_space=pltpu.MemorySpace.VMEM)


def _r8(n):
    return ((n + 7) // 8) * 8


# -------------------------- weight-slab row layout -----------------------------
SLAB_LANES = max(128, 4 * D_MODEL)          # 128 here; keep lane-dense

KC = KSIZE * C_IN                            # 12
KC_PAD = _r8(KC)                             # 16 (padded im2col contraction dim)

# --- per-layer encoder slab: (N_LAYERS, ENC_ROWS, SLAB_LANES), all offsets %8==0
R_WQ = 0
R_WK = R_WQ + D_MODEL
R_WV = R_WK + D_MODEL
R_WO = R_WV + D_MODEL
R_FFN1 = R_WO + D_MODEL                      # (D, 4D)
R_FFN2 = R_FFN1 + D_MODEL                    # (4D, D)
R_BIAS = R_FFN2 + 4 * D_MODEL                # 8 bias rows
(EB_Q, EB_K, EB_V, EB_O, EB_LNG, EB_LNB, EB_FB1, EB_FB2) = range(8)
ENC_ROWS = _r8(R_BIAS + 8)                   # 296

# --- constants slab: (CONST_ROWS, SLAB_LANES)
C_CONV = 0                                   # (KC_PAD, D) conv weight (zero-padded rows)
C_PE = C_CONV + KC_PAD                       # (SEQ, D)   positional encoding
C_FC1 = C_PE + _r8(SEQ)                      # (D, H)
C_MWQ = C_FC1 + D_MODEL                      # (H, H)
C_MWK = C_MWQ + D_FC_OUT
C_MWV = C_MWK + D_FC_OUT
C_MWO = C_MWV + D_FC_OUT
C_FC2 = C_MWO + D_FC_OUT                     # (H, N_TARGETS)
C_EPROJ = C_FC2 + _r8(D_FC_OUT)              # (D, D) encoder head-membership block-diag
C_OPROJ = C_EPROJ + D_MODEL                  # (H, H) out-module head-membership block-diag
C_BIAS = C_OPROJ + D_FC_OUT                  # 8 bias rows
(CB_CONV, CB_FC1, CB_MBQ, CB_MBK, CB_MBV, CB_MBO, CB_FC2) = range(7)
CONST_ROWS = _r8(C_BIAS + 8)                 # 288


# --------------------------- the single fused kernel ---------------------------
def fused_forward_kernel(patches_ref, enc_ref, const_ref, out_ref, *, batch, seqlen):
    """Whole UnimodalModel forward in one VMEM-resident invocation.

    patches_ref : (B*L, KC_PAD)          host-side im2col of the conv input
    enc_ref     : (N_LAYERS, ENC_ROWS, SLAB_LANES)  packed per-layer encoder weights
    const_ref   : (CONST_ROWS, SLAB_LANES)          packed conv/PE/out-module weights
    out_ref     : (B, 128)   lanes [0:D) = last-timestep feature, [D:D+NT) = activation
    """
    f32 = jnp.float32
    B, L = batch, seqlen
    D, Hd, NT = D_MODEL, D_FC_OUT, N_TARGETS

    def cs(row, nrows, ncols):               # static slice of the constants slab
        return const_ref[row:row + nrows, 0:ncols]

    def es(li, row, nrows, ncols):           # static slice of encoder layer `li`
        return enc_ref[li, row:row + nrows, 0:ncols]

    def attend(q, k, v, proj, scale):
        """Per-head attention over the *leading* axis of (S, M, Dm) q/k/v.

        `proj` is a (Dm, Dm) block-diagonal 0/1 head-membership matrix, so the
        per-head scores come out broadcast across each head's lanes and every
        softmax intermediate stays Dm-lane dense (no (.., n_heads) narrow
        tensors, no per-head lane slices, no 4-D transposes).  Context is an
        unrolled sum over the small static key axis (no broadcast + reduce).
        """
        S, M, Dm = q.shape
        prod = q[:, None] * k[None]                                  # (S,S,M,Dm)
        scores = jnp.dot(prod.reshape(S * S * M, Dm), proj,
                         preferred_element_type=f32)
        scores = scores.reshape(S, S, M, Dm) * scale
        mx = jnp.max(scores, axis=1, keepdims=True)
        e = jnp.exp(scores - mx)
        p = e / jnp.sum(e, axis=1, keepdims=True)                    # exact softmax
        ctx = p[:, 0] * v[0][None]
        for sk in range(1, S):
            ctx = ctx + p[:, sk] * v[sk][None]
        return ctx                                                   # (S, M, Dm)

    # ---- FeatureEmbedding: Conv1d (im2col done host-side) + ReLU + PE ----
    conv_w = cs(C_CONV, KC_PAD, D)                                   # (16, D), pad rows = 0
    conv_b = cs(C_BIAS + CB_CONV, 1, D)                              # (1, D)
    emb = jnp.dot(patches_ref[...], conv_w, preferred_element_type=f32) + conv_b
    emb = jnp.maximum(emb, 0.0)                                      # (B*L, D)
    pe = cs(C_PE, L, D)                                              # (L, D)
    x = emb.reshape(B, L, D) + pe[None]                              # (B, L, D)

    enc_proj = cs(C_EPROJ, D, D)                                     # (D, D) block-diag
    scale = 1.0 / math.sqrt(D // NHEAD)

    # ---- ResidualEncoderBlocks (multimodal=False); static unroll over layers ----
    for li in range(N_LAYERS):
        xf = x.reshape(B * L, D)
        q = (jnp.dot(xf, es(li, R_WQ, D, D), preferred_element_type=f32)
             + es(li, R_BIAS + EB_Q, 1, D)).reshape(B, L, D)
        k = (jnp.dot(xf, es(li, R_WK, D, D), preferred_element_type=f32)
             + es(li, R_BIAS + EB_K, 1, D)).reshape(B, L, D)
        v = (jnp.dot(xf, es(li, R_WV, D, D), preferred_element_type=f32)
             + es(li, R_BIAS + EB_V, 1, D)).reshape(B, L, D)
        # IntraModalityAttention: attention over the batch axis, L batched
        # (exact ScaledDotProductAttention semantics for a (L, B, D) input).
        ctx = attend(q, k, v, enc_proj, scale)                       # (B, L, D)
        att = (jnp.dot(ctx.reshape(B * L, D), es(li, R_WO, D, D),
                       preferred_element_type=f32)
               + es(li, R_BIAS + EB_O, 1, D))                        # (B*L, D)
        # norm2(attention output) + residual(block input)
        mu = jnp.mean(att, axis=-1, keepdims=True)
        var = jnp.mean((att - mu) ** 2, axis=-1, keepdims=True)
        normed = (att - mu) / jnp.sqrt(var + LN_EPS)
        normed = (normed * es(li, R_BIAS + EB_LNG, 1, D)
                  + es(li, R_BIAS + EB_LNB, 1, D))
        y = normed + xf
        # FFN + residual
        h1 = jnp.maximum(
            jnp.dot(y, es(li, R_FFN1, D, 4 * D), preferred_element_type=f32)
            + es(li, R_BIAS + EB_FB1, 1, 4 * D), 0.0)
        h2 = (jnp.dot(h1, es(li, R_FFN2, 4 * D, D), preferred_element_type=f32)
              + es(li, R_BIAS + EB_FB2, 1, D))
        x = (h2 + y).reshape(B, L, D)

    # permute(1,0,2).view(B,-1,D)[:, -1, :]  ==  x[:, L-1, :] in (B, L, D) layout
    last = x[:, L - 1, :]                                            # (B, D)

    # ---- OutModule: fc1 + ReLU + dropout(identity, eval) + MHA(seq=B) + fc2 ----
    z = jnp.maximum(
        jnp.dot(last, cs(C_FC1, D, Hd), preferred_element_type=f32)
        + cs(C_BIAS + CB_FC1, 1, Hd), 0.0)                           # (B, Hd)
    q = (jnp.dot(z, cs(C_MWQ, Hd, Hd), preferred_element_type=f32)
         + cs(C_BIAS + CB_MBQ, 1, Hd)).reshape(B, 1, Hd)
    k = (jnp.dot(z, cs(C_MWK, Hd, Hd), preferred_element_type=f32)
         + cs(C_BIAS + CB_MBK, 1, Hd)).reshape(B, 1, Hd)
    v = (jnp.dot(z, cs(C_MWV, Hd, Hd), preferred_element_type=f32)
         + cs(C_BIAS + CB_MBV, 1, Hd)).reshape(B, 1, Hd)
    out_proj = cs(C_OPROJ, Hd, Hd)
    ctx = attend(q, k, v, out_proj,
                 1.0 / math.sqrt(Hd // OUT_NHEAD)).reshape(B, Hd)
    att = (jnp.dot(ctx, cs(C_MWO, Hd, Hd), preferred_element_type=f32)
           + cs(C_BIAS + CB_MBO, 1, Hd))
    logit = (jnp.dot(att, cs(C_FC2, Hd, NT), preferred_element_type=f32)
             + cs(C_BIAS + CB_FC2, 1, NT))                           # (B, NT)
    # TODO(synk): ACTIVATION_FUNCTIONS[params.task] is not given in the source;
    # assuming a binary task -> Sigmoid final activation.
    act = jax.nn.sigmoid(logit)

    # single merged output slab: lanes [0:D) = feature, [D:D+NT) = activation
    out_ref[:, 0:D] = last.astype(out_ref.dtype)
    out_ref[:, D:D + NT] = act.astype(out_ref.dtype)


# ------------------------------- jitted wrapper -------------------------------
@jax.jit
def unimodal_forward(x_list, x_len, enc_slab, const_slab):
    del x_len                                 # unused by the PyTorch forward too
    x = x_list[0]                             # (B, C_in, L)  -- PyTorch NCW
    B, C, L = x.shape
    # Host/XLA-side layout glue (fused into one tiny copy under jit):
    #   NCW -> time-major, zero-pad for the conv, im2col, pad contraction to 16.
    xt = jnp.transpose(x, (0, 2, 1))                                 # (B, L, C)
    xp = jnp.pad(xt, ((0, 0), (KSIZE // 2, KSIZE // 2), (0, 0)))     # (B, L+2, C)
    patches = jnp.concatenate([xp[:, k:k + L, :] for k in range(KSIZE)], axis=-1)
    patches = patches.reshape(B * L, KSIZE * C)
    patches = jnp.pad(patches, ((0, 0), (0, KC_PAD - KSIZE * C)))    # (B*L, 16)

    out = pl.pallas_call(
        partial(fused_forward_kernel, batch=B, seqlen=L),
        out_shape=jax.ShapeDtypeStruct((B, 128), jnp.float32),
        in_specs=[_VMEM, _VMEM, _VMEM],
        out_specs=_VMEM,
    )(patches, enc_slab, const_slab)

    activation = out[:, D_MODEL:D_MODEL + N_TARGETS]
    last_feat = out[:, :D_MODEL]
    return activation, last_feat


# ------------------------------- params / init --------------------------------
def make_positional_encoding(length, d_model):
    pos = np.arange(length, dtype=np.float32)[:, None]
    div = np.exp(np.arange(0, d_model, 2, dtype=np.float32) *
                 (-math.log(10000.0) / d_model))
    pe = np.zeros((length, d_model), np.float32)
    pe[:, 0::2] = np.sin(pos * div)
    pe[:, 1::2] = np.cos(pos * div)
    return pe


def _head_proj(dim, heads):
    """(dim, dim) block-diagonal 0/1 head-membership matrix."""
    hd = dim // heads
    idx = np.arange(dim) // hd
    return (idx[:, None] == idx[None, :]).astype(np.float32)


def init_params(key):
    keys = iter(jax.random.split(key, 64))

    def w(shape, scale=0.05):
        return np.asarray(scale * jax.random.normal(next(keys), shape,
                                                    dtype=jnp.float32))

    # NOTE on weight-import conventions (silent-wrongness trap when porting real
    # PyTorch checkpoints):
    #   * linears are stored (in, out) == torch_weight.T
    #   * conv_w rows are ordered [tap k, channel c]; from a PyTorch Conv1d
    #     weight (D, C_in, K): w.permute(2, 1, 0).reshape(K*C_in, D)
    #   * mha_wq/wk/wv are the row-blocks of in_proj_weight (transposed).
    return {
        "conv_w": w((KC, D_MODEL)),
        "conv_b": w((1, D_MODEL)),
        "pe": make_positional_encoding(MAX_LEN, D_MODEL),
        # encoder layers, stacked on a leading N_LAYERS axis
        "enc_wq": w((N_LAYERS, D_MODEL, D_MODEL)),
        "enc_wk": w((N_LAYERS, D_MODEL, D_MODEL)),
        "enc_wv": w((N_LAYERS, D_MODEL, D_MODEL)),
        "enc_wo": w((N_LAYERS, D_MODEL, D_MODEL)),
        "enc_bq": w((N_LAYERS, 1, D_MODEL)),
        "enc_bk": w((N_LAYERS, 1, D_MODEL)),
        "enc_bv": w((N_LAYERS, 1, D_MODEL)),
        "enc_bo": w((N_LAYERS, 1, D_MODEL)),
        "enc_ln2_g": 1.0 + w((N_LAYERS, 1, D_MODEL)),
        "enc_ln2_b": w((N_LAYERS, 1, D_MODEL)),
        "enc_ffn_w1": w((N_LAYERS, D_MODEL, 4 * D_MODEL)),
        "enc_ffn_b1": w((N_LAYERS, 1, 4 * D_MODEL)),
        "enc_ffn_w2": w((N_LAYERS, 4 * D_MODEL, D_MODEL)),
        "enc_ffn_b2": w((N_LAYERS, 1, D_MODEL)),
        # out module
        "fc1_w": w((D_MODEL, D_FC_OUT)), "fc1_b": w((1, D_FC_OUT)),
        "mha_wq": w((D_FC_OUT, D_FC_OUT)), "mha_bq": w((1, D_FC_OUT)),
        "mha_wk": w((D_FC_OUT, D_FC_OUT)), "mha_bk": w((1, D_FC_OUT)),
        "mha_wv": w((D_FC_OUT, D_FC_OUT)), "mha_bv": w((1, D_FC_OUT)),
        "mha_wo": w((D_FC_OUT, D_FC_OUT)), "mha_bo": w((1, D_FC_OUT)),
        "fc2_w": w((D_FC_OUT, N_TARGETS)), "fc2_b": w((1, N_TARGETS)),
    }


def pack_params(p):
    """Pack all weights into the two lane-dense VMEM slabs (done once at init)."""
    D, Hd = D_MODEL, D_FC_OUT

    enc = np.zeros((N_LAYERS, ENC_ROWS, SLAB_LANES), np.float32)
    for li in range(N_LAYERS):
        enc[li, R_WQ:R_WQ + D, :D] = p["enc_wq"][li]
        enc[li, R_WK:R_WK + D, :D] = p["enc_wk"][li]
        enc[li, R_WV:R_WV + D, :D] = p["enc_wv"][li]
        enc[li, R_WO:R_WO + D, :D] = p["enc_wo"][li]
        enc[li, R_FFN1:R_FFN1 + D, :4 * D] = p["enc_ffn_w1"][li]
        enc[li, R_FFN2:R_FFN2 + 4 * D, :D] = p["enc_ffn_w2"][li]
        enc[li, R_BIAS + EB_Q, :D] = p["enc_bq"][li, 0]
        enc[li, R_BIAS + EB_K, :D] = p["enc_bk"][li, 0]
        enc[li, R_BIAS + EB_V, :D] = p["enc_bv"][li, 0]
        enc[li, R_BIAS + EB_O, :D] = p["enc_bo"][li, 0]
        enc[li, R_BIAS + EB_LNG, :D] = p["enc_ln2_g"][li, 0]
        enc[li, R_BIAS + EB_LNB, :D] = p["enc_ln2_b"][li, 0]
        enc[li, R_BIAS + EB_FB1, :4 * D] = p["enc_ffn_b1"][li, 0]
        enc[li, R_BIAS + EB_FB2, :D] = p["enc_ffn_b2"][li, 0]

    const = np.zeros((CONST_ROWS, SLAB_LANES), np.float32)
    const[C_CONV:C_CONV + KC, :D] = p["conv_w"]          # pad rows stay zero
    const[C_PE:C_PE + SEQ, :D] = p["pe"][:SEQ]
    const[C_FC1:C_FC1 + D, :Hd] = p["fc1_w"]
    const[C_MWQ:C_MWQ + Hd, :Hd] = p["mha_wq"]
    const[C_MWK:C_MWK + Hd, :Hd] = p["mha_wk"]
    const[C_MWV:C_MWV + Hd, :Hd] = p["mha_wv"]
    const[C_MWO:C_MWO + Hd, :Hd] = p["mha_wo"]
    const[C_FC2:C_FC2 + Hd, :N_TARGETS] = p["fc2_w"]
    const[C_EPROJ:C_EPROJ + D, :D] = _head_proj(D, NHEAD)
    const[C_OPROJ:C_OPROJ + Hd, :Hd] = _head_proj(Hd, OUT_NHEAD)
    const[C_BIAS + CB_CONV, :D] = p["conv_b"][0]
    const[C_BIAS + CB_FC1, :Hd] = p["fc1_b"][0]
    const[C_BIAS + CB_MBQ, :Hd] = p["mha_bq"][0]
    const[C_BIAS + CB_MBK, :Hd] = p["mha_bk"][0]
    const[C_BIAS + CB_MBV, :Hd] = p["mha_bv"][0]
    const[C_BIAS + CB_MBO, :Hd] = p["mha_bo"][0]
    const[C_BIAS + CB_FC2, :N_TARGETS] = p["fc2_b"][0]
    return jnp.asarray(enc), jnp.asarray(const)


# ------------------------- pure-JAX (XLA) reference ---------------------------
def unimodal_forward_reference(x_list, x_len, p):
    """Op-for-op mirror of the PyTorch module, in plain jnp (no Pallas)."""
    del x_len
    x = x_list[0]                                          # (B, C_in, L)
    B, C, L = x.shape
    D, dk = D_MODEL, D_MODEL // NHEAD
    # Conv1d + ReLU
    xp = jnp.pad(x, ((0, 0), (0, 0), (1, 1)))
    w = jnp.asarray(p["conv_w"]).reshape(KSIZE, C, D)
    y = jnp.zeros((B, L, D), jnp.float32)
    for k in range(KSIZE):
        y = y + jnp.einsum('bcl,cd->bld', xp[:, :, k:k + L], w[k])
    y = jax.nn.relu(y + p["conv_b"])
    # permute(2,0,1) + positional encoding -> (L, B, D)
    h = jnp.transpose(y, (1, 0, 2)) + jnp.asarray(p["pe"])[:L][:, None, :]
    # encoder blocks
    for li in range(N_LAYERS):
        q = h @ p["enc_wq"][li] + p["enc_bq"][li]
        k_ = h @ p["enc_wk"][li] + p["enc_bk"][li]
        v = h @ p["enc_wv"][li] + p["enc_bv"][li]
        q = q.reshape(L, B, NHEAD, dk).transpose(0, 2, 1, 3)
        k_ = k_.reshape(L, B, NHEAD, dk).transpose(0, 2, 1, 3)
        v = v.reshape(L, B, NHEAD, dk).transpose(0, 2, 1, 3)
        s = jnp.einsum('lhbd,lhcd->lhbc', q, k_) / np.sqrt(dk)
        pr = jax.nn.softmax(s, axis=-1)
        ctx = jnp.einsum('lhbc,lhcd->lhbd', pr, v)
        ctx = ctx.transpose(0, 2, 1, 3).reshape(L, B, D)
        att = ctx @ p["enc_wo"][li] + p["enc_bo"][li]
        mu = att.mean(-1, keepdims=True)
        var = ((att - mu) ** 2).mean(-1, keepdims=True)
        normed = (att - mu) / jnp.sqrt(var + LN_EPS)
        normed = normed * p["enc_ln2_g"][li] + p["enc_ln2_b"][li]
        y2 = normed + h
        f = jax.nn.relu(y2 @ p["enc_ffn_w1"][li] + p["enc_ffn_b1"][li])
        f = f @ p["enc_ffn_w2"][li] + p["enc_ffn_b2"][li]
        h = f + y2
    last = h[-1]                                           # (B, D)
    # out module
    z = jax.nn.relu(last @ p["fc1_w"] + p["fc1_b"])
    Hn, hd = D_FC_OUT, D_FC_OUT // OUT_NHEAD
    q = (z @ p["mha_wq"] + p["mha_bq"]).reshape(B, OUT_NHEAD, hd)
    k_ = (z @ p["mha_wk"] + p["mha_bk"]).reshape(B, OUT_NHEAD, hd)
    v = (z @ p["mha_wv"] + p["mha_bv"]).reshape(B, OUT_NHEAD, hd)
    s = jnp.einsum('bhd,chd->hbc', q, k_) / np.sqrt(hd)
    pr = jax.nn.softmax(s, axis=-1)
    ctx = jnp.einsum('hbc,chd->bhd', pr, v).reshape(B, Hn)
    att = ctx @ p["mha_wo"] + p["mha_bo"]
    out = att @ p["fc2_w"] + p["fc2_b"]
    return jax.nn.sigmoid(out), last


# ----------------------------------- main -----------------------------------
if __name__ == "__main__":
    key = jax.random.PRNGKey(0)
    pkey, xkey = jax.random.split(key)
    params = init_params(pkey)
    enc_slab, const_slab = pack_params(params)

    x = jax.random.normal(xkey, (BATCH, C_IN, SEQ), dtype=jnp.float32)
    x_len = jnp.full((BATCH,), SEQ, dtype=jnp.int32)

    activation, last_feat = unimodal_forward([x], x_len, enc_slab, const_slab)
    jax.block_until_ready((activation, last_feat))

    assert activation.shape == (BATCH, N_TARGETS)
    assert last_feat.shape == (BATCH, D_MODEL)
    assert bool(jnp.all(jnp.isfinite(activation)))
    assert bool(jnp.all(jnp.isfinite(last_feat)))

    # correctness vs. a pure-JAX reference (exact softmax now -> tight tolerance)
    act_ref, feat_ref = unimodal_forward_reference([x], x_len, params)
    np.testing.assert_allclose(np.asarray(activation), np.asarray(act_ref),
                               rtol=1e-4, atol=1e-4)
    np.testing.assert_allclose(np.asarray(last_feat), np.asarray(feat_ref),
                               rtol=1e-4, atol=1e-4)

    print("KERNEL_OK")
</pallas_src>

<mosaic_0001>
module attributes {stable_mosaic.version = 11 : i64} {
  func.func @fused_forward_kernel(%arg0: memref<16x16xf32, #tpu.memory_space<vmem>>, %arg1: memref<2x296x128xf32, #tpu.memory_space<vmem>>, %arg2: memref<288x128xf32, #tpu.memory_space<vmem>>, %arg3: memref<2x128xf32, #tpu.memory_space<vmem>>) attributes {dimension_semantics = [], scalar_prefetch = 0 : i64, scratch_operands = 0 : i64, tpu.core_type = #tpu.core_type<tc>} {
    %c0 = arith.constant 0 : index
    %c0_0 = arith.constant 0 : index
    %0 = vector.load %arg2[%c0, %c0_0] : memref<288x128xf32, #tpu.memory_space<vmem>>, vector<16x32xf32>
    %c280 = arith.constant 280 : index
    %c0_1 = arith.constant 0 : index
    %1 = vector.load %arg2[%c280, %c0_1] : memref<288x128xf32, #tpu.memory_space<vmem>>, vector<1x32xf32>
    %c0_2 = arith.constant 0 : index
    %c0_3 = arith.constant 0 : index
    %2 = vector.load %arg0[%c0_2, %c0_3] : memref<16x16xf32, #tpu.memory_space<vmem>>, vector<16x16xf32>
    %cst = arith.constant dense<0.000000e+00> : vector<16x32xf32>
    %3 = tpu.matmul %2, %0, %cst {dimension_numbers = #tpu.dot_dimension_numbers<[1], [0], [0], [1], [0, 0, 1, 1], [], []>} : vector<16x16xf32>, vector<16x32xf32>, vector<16x32xf32> -> vector<16x32xf32>
    %4 = vector.broadcast %1 : vector<1x32xf32> to vector<16x32xf32>
    %5 = arith.addf %3, %4 : vector<16x32xf32>
    %cst_4 = arith.constant 0.000000e+00 : f32
    %6 = vector.broadcast %cst_4 : f32 to vector<16x32xf32>
    %7 = arith.maximumf %5, %6 : vector<16x32xf32>
    %c16 = arith.constant 16 : index
    %c0_5 = arith.constant 0 : index
    %8 = vector.load %arg2[%c16, %c0_5] : memref<288x128xf32, #tpu.memory_space<vmem>>, vector<8x32xf32>
    %9 = vector.shape_cast %7 : vector<16x32xf32> to vector<2x8x32xf32>
    %10 = vector.shape_cast %8 : vector<8x32xf32> to vector<1x8x32xf32>
    %11 = vector.broadcast %10 : vector<1x8x32xf32> to vector<2x8x32xf32>
    %12 = arith.addf %9, %11 : vector<2x8x32xf32>
    %c216 = arith.constant 216 : index
    %c0_6 = arith.constant 0 : index
    %13 = vector.load %arg2[%c216, %c0_6] : memref<288x128xf32, #tpu.memory_space<vmem>>, vector<32x32xf32>
    %14 = vector.shape_cast %12 : vector<2x8x32xf32> to vector<16x32xf32>
    %c0_7 = arith.constant 0 : index
    %c0_8 = arith.constant 0 : index
    %c0_9 = arith.constant 0 : index
    %15 = vector.load %arg1[%c0_7, %c0_8, %c0_9] : memref<2x296x128xf32, #tpu.memory_space<vmem>>, vector<1x32x32xf32>
    %16 = vector.shape_cast %15 : vector<1x32x32xf32> to vector<32x32xf32>
    %cst_10 = arith.constant dense<0.000000e+00> : vector<16x32xf32>
    %17 = tpu.matmul %14, %16, %cst_10 {dimension_numbers = #tpu.dot_dimension_numbers<[1], [0], [0], [1], [0, 0, 1, 1], [], []>} : vector<16x32xf32>, vector<32x32xf32>, vector<16x32xf32> -> vector<16x32xf32>
    %c0_11 = arith.constant 0 : index
    %c288 = arith.constant 288 : index
    %c0_12 = arith.constant 0 : index
    %18 = vector.load %arg1[%c0_11, %c288, %c0_12] : memref<2x296x128xf32, #tpu.memory_space<vmem>>, vector<1x1x32xf32>
    %19 = vector.shape_cast %18 : vector<1x1x32xf32> to vector<1x32xf32>
    %20 = vector.broadcast %19 : vector<1x32xf32> to vector<16x32xf32>
    %21 = arith.addf %17, %20 : vector<16x32xf32>
    %22 = vector.shape_cast %21 : vector<16x32xf32> to vector<2x8x32xf32>
    %c0_13 = arith.constant 0 : index
    %c32 = arith.constant 32 : index
    %c0_14 = arith.constant 0 : index
    %23 = vector.load %arg1[%c0_13, %c32, %c0_14] : memref<2x296x128xf32, #tpu.memory_space<vmem>>, vector<1x32x32xf32>
    %24 = vector.shape_cast %23 : vector<1x32x32xf32> to vector<32x32xf32>
    %cst_15 = arith.constant dense<0.000000e+00> : vector<16x32xf32>
    %25 = tpu.matmul %14, %24, %cst_15 {dimension_numbers = #tpu.dot_dimension_numbers<[1], [0], [0], [1], [0, 0, 1, 1], [], []>} : vector<16x32xf32>, vector<32x32xf32>, vector<16x32xf32> -> vector<16x32xf32>
    %c0_16 = arith.constant 0 : index
    %c289 = arith.constant 289 : index
    %c0_17 = arith.constant 0 : index
    %26 = vector.load %arg1[%c0_16, %c289, %c0_17] : memref<2x296x128xf32, #tpu.memory_space<vmem>>, vector<1x1x32xf32>
    %27 = vector.shape_cast %26 : vector<1x1x32xf32> to vector<1x32xf32>
    %28 = vector.broadcast %27 : vector<1x32xf32> to vector<16x32xf32>
    %29 = arith.addf %25, %28 : vector<16x32xf32>
    %30 = vector.shape_cast %29 : vector<16x32xf32> to vector<2x8x32xf32>
    %c0_18 = arith.constant 0 : index
    %c64 = arith.constant 64 : index
    %c0_19 = arith.constant 0 : index
    %31 = vector.load %arg1[%c0_18, %c64, %c0_19] : memref<2x296x128xf32, #tpu.memory_space<vmem>>, vector<1x32x32xf32>
    %32 = vector.shape_cast %31 : vector<1x32x32xf32> to vector<32x32xf32>
    %cst_20 = arith.constant dense<0.000000e+00> : vector<16x32xf32>
    %33 = tpu.matmul %14, %32, %cst_20 {dimension_numbers = #tpu.dot_dimension_numbers<[1], [0], [0], [1], [0, 0, 1, 1], [], []>} : vector<16x32xf32>, vector<32x32xf32>, vector<16x32xf32> -> vector<16x32xf32>
    %c0_21 = arith.constant 0 : index
    %c290 = arith.constant 290 : index
    %c0_22 = arith.constant 0 : index
    %34 = vector.load %arg1[%c0_21, %c290, %c0_22] : memref<2x296x128xf32, #tpu.memory_space<vmem>>, vector<1x1x32xf32>
    %35 = vector.shape_cast %34 : vector<1x1x32xf32> to vector<1x32xf32>
    %36 = vector.broadcast %35 : vector<1x32xf32> to vector<16x32xf32>
    %37 = arith.addf %33, %36 : vector<16x32xf32>
    %38 = vector.shape_cast %37 : vector<16x32xf32> to vector<2x8x32xf32>
    %39 = vector.shape_cast %22 : vector<2x8x32xf32> to vector<2x1x8x32xf32>
    %40 = vector.shape_cast %30 : vector<2x8x32xf32> to vector<1x2x8x32xf32>
    %41 = vector.broadcast %39 : vector<2x1x8x32xf32> to vector<2x2x8x32xf32>
    %42 = vector.broadcast %40 : vector<1x2x8x32xf32> to vector<2x2x8x32xf32>
    %43 = arith.mulf %41, %42 : vector<2x2x8x32xf32>
    %44 = vector.shape_cast %43 : vector<2x2x8x32xf32> to vector<32x32xf32>
    %cst_23 = arith.constant dense<0.000000e+00> : vector<32x32xf32>
    %45 = tpu.matmul %44, %13, %cst_23 {dimension_numbers = #tpu.dot_dimension_numbers<[1], [0], [0], [1], [0, 0, 1, 1], [], []>} : vector<32x32xf32>, vector<32x32xf32>, vector<32x32xf32> -> vector<32x32xf32>
    %46 = vector.shape_cast %45 : vector<32x32xf32> to vector<2x2x8x32xf32>
    %cst_24 = arith.constant 0.353553385 : f32
    %47 = vector.broadcast %cst_24 : f32 to vector<2x2x8x32xf32>
    %48 = arith.mulf %46, %47 : vector<2x2x8x32xf32>
    %cst_25 = arith.constant dense<0xFF800000> : vector<2x8x32xf32>
    %49 = vector.multi_reduction <maximumf>, %48, %cst_25 [1] : vector<2x2x8x32xf32> to vector<2x8x32xf32>
    %50 = vector.shape_cast %49 : vector<2x8x32xf32> to vector<2x1x8x32xf32>
    %51 = vector.broadcast %50 : vector<2x1x8x32xf32> to vector<2x2x8x32xf32>
    %52 = arith.subf %48, %51 : vector<2x2x8x32xf32>
    %53 = math.exp %52 : vector<2x2x8x32xf32>
    %cst_26 = arith.constant dense<0.000000e+00> : vector<2x8x32xf32>
    %54 = vector.multi_reduction <add>, %53, %cst_26 [1] : vector<2x2x8x32xf32> to vector<2x8x32xf32>
    %55 = vector.shape_cast %54 : vector<2x8x32xf32> to vector<2x1x8x32xf32>
    %56 = vector.broadcast %55 : vector<2x1x8x32xf32> to vector<2x2x8x32xf32>
    %57 = arith.divf %53, %56 : vector<2x2x8x32xf32>
    %58 = vector.extract_strided_slice %57 {offsets = [0, 0, 0, 0], sizes = [2, 1, 8, 32], strides = [1, 1, 1, 1]} : vector<2x2x8x32xf32> to vector<2x1x8x32xf32>
    %59 = vector.shape_cast %58 : vector<2x1x8x32xf32> to vector<2x8x32xf32>
    %60 = vector.extract_strided_slice %38 {offsets = [0, 0, 0], sizes = [1, 8, 32], strides = [1, 1, 1]} : vector<2x8x32xf32> to vector<1x8x32xf32>
    %61 = vector.shape_cast %60 : vector<1x8x32xf32> to vector<8x32xf32>
    %62 = vector.shape_cast %61 : vector<8x32xf32> to vector<1x8x32xf32>
    %63 = vector.broadcast %62 : vector<1x8x32xf32> to vector<2x8x32xf32>
    %64 = arith.mulf %59, %63 : vector<2x8x32xf32>
    %65 = vector.extract_strided_slice %57 {offsets = [0, 1, 0, 0], sizes = [2, 1, 8, 32], strides = [1, 1, 1, 1]} : vector<2x2x8x32xf32> to vector<2x1x8x32xf32>
    %66 = vector.shape_cast %65 : vector<2x1x8x32xf32> to vector<2x8x32xf32>
    %67 = vector.extract_strided_slice %38 {offsets = [1, 0, 0], sizes = [1, 8, 32], strides = [1, 1, 1]} : vector<2x8x32xf32> to vector<1x8x32xf32>
    %68 = vector.shape_cast %67 : vector<1x8x32xf32> to vector<8x32xf32>
    %69 = vector.shape_cast %68 : vector<8x32xf32> to vector<1x8x32xf32>
    %70 = vector.broadcast %69 : vector<1x8x32xf32> to vector<2x8x32xf32>
    %71 = arith.mulf %66, %70 : vector<2x8x32xf32>
    %72 = arith.addf %64, %71 : vector<2x8x32xf32>
    %73 = vector.shape_cast %72 : vector<2x8x32xf32> to vector<16x32xf32>
    %c0_27 = arith.constant 0 : index
    %c96 = arith.constant 96 : index
    %c0_28 = arith.constant 0 : index
    %74 = vector.load %arg1[%c0_27, %c96, %c0_28] : memref<2x296x128xf32, #tpu.memory_space<vmem>>, vector<1x32x32xf32>
    %75 = vector.shape_cast %74 : vector<1x32x32xf32> to vector<32x32xf32>
    %cst_29 = arith.constant dense<0.000000e+00> : vector<16x32xf32>
    %76 = tpu.matmul %73, %75, %cst_29 {dimension_numbers = #tpu.dot_dimension_numbers<[1], [0], [0], [1], [0, 0, 1, 1], [], []>} : vector<16x32xf32>, vector<32x32xf32>, vector<16x32xf32> -> vector<16x32xf32>
    %c0_30 = arith.constant 0 : index
    %c291 = arith.constant 291 : index
    %c0_31 = arith.constant 0 : index
    %77 = vector.load %arg1[%c0_30, %c291, %c0_31] : memref<2x296x128xf32, #tpu.memory_space<vmem>>, vector<1x1x32xf32>
    %78 = vector.shape_cast %77 : vector<1x1x32xf32> to vector<1x32xf32>
    %79 = vector.broadcast %78 : vector<1x32xf32> to vector<16x32xf32>
    %80 = arith.addf %76, %79 : vector<16x32xf32>
    %cst_32 = arith.constant dense<0.000000e+00> : vector<16xf32>
    %81 = vector.multi_reduction <add>, %80, %cst_32 [1] : vector<16x32xf32> to vector<16xf32>
    %82 = vector.shape_cast %81 : vector<16xf32> to vector<16x1xf32>
    %cst_33 = arith.constant 3.200000e+01 : f32
    %83 = vector.broadcast %cst_33 : f32 to vector<16x1xf32>
    %84 = arith.divf %82, %83 : vector<16x1xf32>
    %85 = vector.broadcast %84 : vector<16x1xf32> to vector<16x32xf32>
    %86 = arith.subf %80, %85 : vector<16x32xf32>
    %87 = arith.mulf %86, %86 : vector<16x32xf32>
    %cst_34 = arith.constant dense<0.000000e+00> : vector<16xf32>
    %88 = vector.multi_reduction <add>, %87, %cst_34 [1] : vector<16x32xf32> to vector<16xf32>
    %89 = vector.shape_cast %88 : vector<16xf32> to vector<16x1xf32>
    %cst_35 = arith.constant 3.200000e+01 : f32
    %90 = vector.broadcast %cst_35 : f32 to vector<16x1xf32>
    %91 = arith.divf %89, %90 : vector<16x1xf32>
    %92 = vector.broadcast %84 : vector<16x1xf32> to vector<16x32xf32>
    %93 = arith.subf %80, %92 : vector<16x32xf32>
    %cst_36 = arith.constant 9.99999974E-6 : f32
    %94 = vector.broadcast %cst_36 : f32 to vector<16x1xf32>
    %95 = arith.addf %91, %94 : vector<16x1xf32>
    %96 = math.sqrt %95 : vector<16x1xf32>
    %97 = vector.broadcast %96 : vector<16x1xf32> to vector<16x32xf32>
    %98 = arith.divf %93, %97 : vector<16x32xf32>
    %c0_37 = arith.constant 0 : index
    %c292 = arith.constant 292 : index
    %c0_38 = arith.constant 0 : index
    %99 = vector.load %arg1[%c0_37, %c292, %c0_38] : memref<2x296x128xf32, #tpu.memory_space<vmem>>, vector<1x1x32xf32>
    %100 = vector.shape_cast %99 : vector<1x1x32xf32> to vector<1x32xf32>
    %101 = vector.broadcast %100 : vector<1x32xf32> to vector<16x32xf32>
    %102 = arith.mulf %98, %101 : vector<16x32xf32>
    %c0_39 = arith.constant 0 : index
    %c293 = arith.constant 293 : index
    %c0_40 = arith.constant 0 : index
    %103 = vector.load %arg1[%c0_39, %c293, %c0_40] : memref<2x296x128xf32, #tpu.memory_space<vmem>>, vector<1x1x32xf32>
    %104 = vector.shape_cast %103 : vector<1x1x32xf32> to vector<1x32xf32>
    %105 = vector.broadcast %104 : vector<1x32xf32> to vector<16x32xf32>
    %106 = arith.addf %102, %105 : vector<16x32xf32>
    %107 = arith.addf %106, %14 : vector<16x32xf32>
    %c0_41 = arith.constant 0 : index
    %c128 = arith.constant 128 : index
    %c0_42 = arith.constant 0 : index
    %108 = vector.load %arg1[%c0_41, %c128, %c0_42] : memref<2x296x128xf32, #tpu.memory_space<vmem>>, vector<1x32x128xf32>
    %109 = vector.shape_cast %108 : vector<1x32x128xf32> to vector<32x128xf32>
    %cst_43 = arith.constant dense<0.000000e+00> : vector<16x128xf32>
    %110 = tpu.matmul %107, %109, %cst_43 {dimension_numbers = #tpu.dot_dimension_numbers<[1], [0], [0], [1], [0, 0, 1, 1], [], []>} : vector<16x32xf32>, vector<32x128xf32>, vector<16x128xf32> -> vector<16x128xf32>
    %c0_44 = arith.constant 0 : index
    %c294 = arith.constant 294 : index
    %c0_45 = arith.constant 0 : index
    %111 = vector.load %arg1[%c0_44, %c294, %c0_45] : memref<2x296x128xf32, #tpu.memory_space<vmem>>, vector<1x1x128xf32>
    %112 = vector.shape_cast %111 : vector<1x1x128xf32> to vector<1x128xf32>
    %113 = vector.broadcast %112 : vector<1x128xf32> to vector<16x128xf32>
    %114 = arith.addf %110, %113 : vector<16x128xf32>
    %cst_46 = arith.constant 0.000000e+00 : f32
    %115 = vector.broadcast %cst_46 : f32 to vector<16x128xf32>
    %116 = arith.maximumf %114, %115 : vector<16x128xf32>
    %c0_47 = arith.constant 0 : index
    %c160 = arith.constant 160 : index
    %c0_48 = arith.constant 0 : index
    %117 = vector.load %arg1[%c0_47, %c160, %c0_48] : memref<2x296x128xf32, #tpu.memory_space<vmem>>, vector<1x128x32xf32>
    %118 = vector.shape_cast %117 : vector<1x128x32xf32> to vector<128x32xf32>
    %cst_49 = arith.constant dense<0.000000e+00> : vector<16x32xf32>
    %119 = tpu.matmul %116, %118, %cst_49 {dimension_numbers = #tpu.dot_dimension_numbers<[1], [0], [0], [1], [0, 0, 1, 1], [], []>} : vector<16x128xf32>, vector<128x32xf32>, vector<16x32xf32> -> vector<16x32xf32>
    %c0_50 = arith.constant 0 : index
    %c295 = arith.constant 295 : index
    %c0_51 = arith.constant 0 : index
    %120 = vector.load %arg1[%c0_50, %c295, %c0_51] : memref<2x296x128xf32, #tpu.memory_space<vmem>>, vector<1x1x32xf32>
    %121 = vector.shape_cast %120 : vector<1x1x32xf32> to vector<1x32xf32>
    %122 = vector.broadcast %121 : vector<1x32xf32> to vector<16x32xf32>
    %123 = arith.addf %119, %122 : vector<16x32xf32>
    %124 = arith.addf %123, %107 : vector<16x32xf32>
    %125 = vector.shape_cast %124 : vector<16x32xf32> to vector<2x8x32xf32>
    %126 = vector.shape_cast %125 : vector<2x8x32xf32> to vector<16x32xf32>
    %c1 = arith.constant 1 : index
    %c0_52 = arith.constant 0 : index
    %c0_53 = arith.constant 0 : index
    %127 = vector.load %arg1[%c1, %c0_52, %c0_53] : memref<2x296x128xf32, #tpu.memory_space<vmem>>, vector<1x32x32xf32>
    %128 = vector.shape_cast %127 : vector<1x32x32xf32> to vector<32x32xf32>
    %cst_54 = arith.constant dense<0.000000e+00> : vector<16x32xf32>
    %129 = tpu.matmul %126, %128, %cst_54 {dimension_numbers = #tpu.dot_dimension_numbers<[1], [0], [0], [1], [0, 0, 1, 1], [], []>} : vector<16x32xf32>, vector<32x32xf32>, vector<16x32xf32> -> vector<16x32xf32>
    %c1_55 = arith.constant 1 : index
    %c288_56 = arith.constant 288 : index
    %c0_57 = arith.constant 0 : index
    %130 = vector.load %arg1[%c1_55, %c288_56, %c0_57] : memref<2x296x128xf32, #tpu.memory_space<vmem>>, vector<1x1x32xf32>
    %131 = vector.shape_cast %130 : vector<1x1x32xf32> to vector<1x32xf32>
    %132 = vector.broadcast %131 : vector<1x32xf32> to vector<16x32xf32>
    %133 = arith.addf %129, %132 : vector<16x32xf32>
    %134 = vector.shape_cast %133 : vector<16x32xf32> to vector<2x8x32xf32>
    %c1_58 = arith.constant 1 : index
    %c32_59 = arith.constant 32 : index
    %c0_60 = arith.constant 0 : index
    %135 = vector.load %arg1[%c1_58, %c32_59, %c0_60] : memref<2x296x128xf32, #tpu.memory_space<vmem>>, vector<1x32x32xf32>
    %136 = vector.shape_cast %135 : vector<1x32x32xf32> to vector<32x32xf32>
    %cst_61 = arith.constant dense<0.000000e+00> : vector<16x32xf32>
    %137 = tpu.matmul %126, %136, %cst_61 {dimension_numbers = #tpu.dot_dimension_numbers<[1], [0], [0], [1], [0, 0, 1, 1], [], []>} : vector<16x32xf32>, vector<32x32xf32>, vector<16x32xf32> -> vector<16x32xf32>
    %c1_62 = arith.constant 1 : index
    %c289_63 = arith.constant 289 : index
    %c0_64 = arith.constant 0 : index
    %138 = vector.load %arg1[%c1_62, %c289_63, %c0_64] : memref<2x296x128xf32, #tpu.memory_space<vmem>>, vector<1x1x32xf32>
    %139 = vector.shape_cast %138 : vector<1x1x32xf32> to vector<1x32xf32>
    %140 = vector.broadcast %139 : vector<1x32xf32> to vector<16x32xf32>
    %141 = arith.addf %137, %140 : vector<16x32xf32>
    %142 = vector.shape_cast %141 : vector<16x32xf32> to vector<2x8x32xf32>
    %c1_65 = arith.constant 1 : index
    %c64_66 = arith.constant 64 : index
    %c0_67 = arith.constant 0 : index
    %143 = vector.load %arg1[%c1_65, %c64_66, %c0_67] : memref<2x296x128xf32, #tpu.memory_space<vmem>>, vector<1x32x32xf32>
    %144 = vector.shape_cast %143 : vector<1x32x32xf32> to vector<32x32xf32>
    %cst_68 = arith.constant dense<0.000000e+00> : vector<16x32xf32>
    %145 = tpu.matmul %126, %144, %cst_68 {dimension_numbers = #tpu.dot_dimension_numbers<[1], [0], [0], [1], [0, 0, 1, 1], [], []>} : vector<16x32xf32>, vector<32x32xf32>, vector<16x32xf32> -> vector<16x32xf32>
    %c1_69 = arith.constant 1 : index
    %c290_70 = arith.constant 290 : index
    %c0_71 = arith.constant 0 : index
    %146 = vector.load %arg1[%c1_69, %c290_70, %c0_71] : memref<2x296x128xf32, #tpu.memory_space<vmem>>, vector<1x1x32xf32>
    %147 = vector.shape_cast %146 : vector<1x1x32xf32> to vector<1x32xf32>
    %148 = vector.broadcast %147 : vector<1x32xf32> to vector<16x32xf32>
    %149 = arith.addf %145, %148 : vector<16x32xf32>
    %150 = vector.shape_cast %149 : vector<16x32xf32> to vector<2x8x32xf32>
    %151 = vector.shape_cast %134 : vector<2x8x32xf32> to vector<2x1x8x32xf32>
    %152 = vector.shape_cast %142 : vector<2x8x32xf32> to vector<1x2x8x32xf32>
    %153 = vector.broadcast %151 : vector<2x1x8x32xf32> to vector<2x2x8x32xf32>
    %154 = vector.broadcast %152 : vector<1x2x8x32xf32> to vector<2x2x8x32xf32>
    %155 = arith.mulf %153, %154 : vector<2x2x8x32xf32>
    %156 = vector.shape_cast %155 : vector<2x2x8x32xf32> to vector<32x32xf32>
    %cst_72 = arith.constant dense<0.000000e+00> : vector<32x32xf32>
    %157 = tpu.matmul %156, %13, %cst_72 {dimension_numbers = #tpu.dot_dimension_numbers<[1], [0], [0], [1], [0, 0, 1, 1], [], []>} : vector<32x32xf32>, vector<32x32xf32>, vector<32x32xf32> -> vector<32x32xf32>
    %158 = vector.shape_cast %157 : vector<32x32xf32> to vector<2x2x8x32xf32>
    %cst_73 = arith.constant 0.353553385 : f32
    %159 = vector.broadcast %cst_73 : f32 to vector<2x2x8x32xf32>
    %160 = arith.mulf %158, %159 : vector<2x2x8x32xf32>
    %cst_74 = arith.constant dense<0xFF800000> : vector<2x8x32xf32>
    %161 = vector.multi_reduction <maximumf>, %160, %cst_74 [1] : vector<2x2x8x32xf32> to vector<2x8x32xf32>
    %162 = vector.shape_cast %161 : vector<2x8x32xf32> to vector<2x1x8x32xf32>
    %163 = vector.broadcast %162 : vector<2x1x8x32xf32> to vector<2x2x8x32xf32>
    %164 = arith.subf %160, %163 : vector<2x2x8x32xf32>
    %165 = math.exp %164 : vector<2x2x8x32xf32>
    %cst_75 = arith.constant dense<0.000000e+00> : vector<2x8x32xf32>
    %166 = vector.multi_reduction <add>, %165, %cst_75 [1] : vector<2x2x8x32xf32> to vector<2x8x32xf32>
    %167 = vector.shape_cast %166 : vector<2x8x32xf32> to vector<2x1x8x32xf32>
    %168 = vector.broadcast %167 : vector<2x1x8x32xf32> to vector<2x2x8x32xf32>
    %169 = arith.divf %165, %168 : vector<2x2x8x32xf32>
    %170 = vector.extract_strided_slice %169 {offsets = [0, 0, 0, 0], sizes = [2, 1, 8, 32], strides = [1, 1, 1, 1]} : vector<2x2x8x32xf32> to vector<2x1x8x32xf32>
    %171 = vector.shape_cast %170 : vector<2x1x8x32xf32> to vector<2x8x32xf32>
    %172 = vector.extract_strided_slice %150 {offsets = [0, 0, 0], sizes = [1, 8, 32], strides = [1, 1, 1]} : vector<2x8x32xf32> to vector<1x8x32xf32>
    %173 = vector.shape_cast %172 : vector<1x8x32xf32> to vector<8x32xf32>
    %174 = vector.shape_cast %173 : vector<8x32xf32> to vector<1x8x32xf32>
    %175 = vector.broadcast %174 : vector<1x8x32xf32> to vector<2x8x32xf32>
    %176 = arith.mulf %171, %175 : vector<2x8x32xf32>
    %177 = vector.extract_strided_slice %169 {offsets = [0, 1, 0, 0], sizes = [2, 1, 8, 32], strides = [1, 1, 1, 1]} : vector<2x2x8x32xf32> to vector<2x1x8x32xf32>
    %178 = vector.shape_cast %177 : vector<2x1x8x32xf32> to vector<2x8x32xf32>
    %179 = vector.extract_strided_slice %150 {offsets = [1, 0, 0], sizes = [1, 8, 32], strides = [1, 1, 1]} : vector<2x8x32xf32> to vector<1x8x32xf32>
    %180 = vector.shape_cast %179 : vector<1x8x32xf32> to vector<8x32xf32>
    %181 = vector.shape_cast %180 : vector<8x32xf32> to vector<1x8x32xf32>
    %182 = vector.broadcast %181 : vector<1x8x32xf32> to vector<2x8x32xf32>
    %183 = arith.mulf %178, %182 : vector<2x8x32xf32>
    %184 = arith.addf %176, %183 : vector<2x8x32xf32>
    %185 = vector.shape_cast %184 : vector<2x8x32xf32> to vector<16x32xf32>
    %c1_76 = arith.constant 1 : index
    %c96_77 = arith.constant 96 : index
    %c0_78 = arith.constant 0 : index
    %186 = vector.load %arg1[%c1_76, %c96_77, %c0_78] : memref<2x296x128xf32, #tpu.memory_space<vmem>>, vector<1x32x32xf32>
    %187 = vector.shape_cast %186 : vector<1x32x32xf32> to vector<32x32xf32>
    %cst_79 = arith.constant dense<0.000000e+00> : vector<16x32xf32>
    %188 = tpu.matmul %185, %187, %cst_79 {dimension_numbers = #tpu.dot_dimension_numbers<[1], [0], [0], [1], [0, 0, 1, 1], [], []>} : vector<16x32xf32>, vector<32x32xf32>, vector<16x32xf32> -> vector<16x32xf32>
    %c1_80 = arith.constant 1 : index
    %c291_81 = arith.constant 291 : index
    %c0_82 = arith.constant 0 : index
    %189 = vector.load %arg1[%c1_80, %c291_81, %c0_82] : memref<2x296x128xf32, #tpu.memory_space<vmem>>, vector<1x1x32xf32>
    %190 = vector.shape_cast %189 : vector<1x1x32xf32> to vector<1x32xf32>
    %191 = vector.broadcast %190 : vector<1x32xf32> to vector<16x32xf32>
    %192 = arith.addf %188, %191 : vector<16x32xf32>
    %cst_83 = arith.constant dense<0.000000e+00> : vector<16xf32>
    %193 = vector.multi_reduction <add>, %192, %cst_83 [1] : vector<16x32xf32> to vector<16xf32>
    %194 = vector.shape_cast %193 : vector<16xf32> to vector<16x1xf32>
    %cst_84 = arith.constant 3.200000e+01 : f32
    %195 = vector.broadcast %cst_84 : f32 to vector<16x1xf32>
    %196 = arith.divf %194, %195 : vector<16x1xf32>
    %197 = vector.broadcast %196 : vector<16x1xf32> to vector<16x32xf32>
    %198 = arith.subf %192, %197 : vector<16x32xf32>
    %199 = arith.mulf %198, %198 : vector<16x32xf32>
    %cst_85 = arith.constant dense<0.000000e+00> : vector<16xf32>
    %200 = vector.multi_reduction <add>, %199, %cst_85 [1] : vector<16x32xf32> to vector<16xf32>
    %201 = vector.shape_cast %200 : vector<16xf32> to vector<16x1xf32>
    %cst_86 = arith.constant 3.200000e+01 : f32
    %202 = vector.broadcast %cst_86 : f32 to vector<16x1xf32>
    %203 = arith.divf %201, %202 : vector<16x1xf32>
    %204 = vector.broadcast %196 : vector<16x1xf32> to vector<16x32xf32>
    %205 = arith.subf %192, %204 : vector<16x32xf32>
    %cst_87 = arith.constant 9.99999974E-6 : f32
    %206 = vector.broadcast %cst_87 : f32 to vector<16x1xf32>
    %207 = arith.addf %203, %206 : vector<16x1xf32>
    %208 = math.sqrt %207 : vector<16x1xf32>
    %209 = vector.broadcast %208 : vector<16x1xf32> to vector<16x32xf32>
    %210 = arith.divf %205, %209 : vector<16x32xf32>
    %c1_88 = arith.constant 1 : index
    %c292_89 = arith.constant 292 : index
    %c0_90 = arith.constant 0 : index
    %211 = vector.load %arg1[%c1_88, %c292_89, %c0_90] : memref<2x296x128xf32, #tpu.memory_space<vmem>>, vector<1x1x32xf32>
    %212 = vector.shape_cast %211 : vector<1x1x32xf32> to vector<1x32xf32>
    %213 = vector.broadcast %212 : vector<1x32xf32> to vector<16x32xf32>
    %214 = arith.mulf %210, %213 : vector<16x32xf32>
    %c1_91 = arith.constant 1 : index
    %c293_92 = arith.constant 293 : index
    %c0_93 = arith.constant 0 : index
    %215 = vector.load %arg1[%c1_91, %c293_92, %c0_93] : memref<2x296x128xf32, #tpu.memory_space<vmem>>, vector<1x1x32xf32>
    %216 = vector.shape_cast %215 : vector<1x1x32xf32> to vector<1x32xf32>
    %217 = vector.broadcast %216 : vector<1x32xf32> to vector<16x32xf32>
    %218 = arith.addf %214, %217 : vector<16x32xf32>
    %219 = arith.addf %218, %126 : vector<16x32xf32>
    %c1_94 = arith.constant 1 : index
    %c128_95 = arith.constant 128 : index
    %c0_96 = arith.constant 0 : index
    %220 = vector.load %arg1[%c1_94, %c128_95, %c0_96] : memref<2x296x128xf32, #tpu.memory_space<vmem>>, vector<1x32x128xf32>
    %221 = vector.shape_cast %220 : vector<1x32x128xf32> to vector<32x128xf32>
    %cst_97 = arith.constant dense<0.000000e+00> : vector<16x128xf32>
    %222 = tpu.matmul %219, %221, %cst_97 {dimension_numbers = #tpu.dot_dimension_numbers<[1], [0], [0], [1], [0, 0, 1, 1], [], []>} : vector<16x32xf32>, vector<32x128xf32>, vector<16x128xf32> -> vector<16x128xf32>
    %c1_98 = arith.constant 1 : index
    %c294_99 = arith.constant 294 : index
    %c0_100 = arith.constant 0 : index
    %223 = vector.load %arg1[%c1_98, %c294_99, %c0_100] : memref<2x296x128xf32, #tpu.memory_space<vmem>>, vector<1x1x128xf32>
    %224 = vector.shape_cast %223 : vector<1x1x128xf32> to vector<1x128xf32>
    %225 = vector.broadcast %224 : vector<1x128xf32> to vector<16x128xf32>
    %226 = arith.addf %222, %225 : vector<16x128xf32>
    %cst_101 = arith.constant 0.000000e+00 : f32
    %227 = vector.broadcast %cst_101 : f32 to vector<16x128xf32>
    %228 = arith.maximumf %226, %227 : vector<16x128xf32>
    %c1_102 = arith.constant 1 : index
    %c160_103 = arith.constant 160 : index
    %c0_104 = arith.constant 0 : index
    %229 = vector.load %arg1[%c1_102, %c160_103, %c0_104] : memref<2x296x128xf32, #tpu.memory_space<vmem>>, vector<1x128x32xf32>
    %230 = vector.shape_cast %229 : vector<1x128x32xf32> to vector<128x32xf32>
    %cst_105 = arith.constant dense<0.000000e+00> : vector<16x32xf32>
    %231 = tpu.matmul %228, %230, %cst_105 {dimension_numbers = #tpu.dot_dimension_numbers<[1], [0], [0], [1], [0, 0, 1, 1], [], []>} : vector<16x128xf32>, vector<128x32xf32>, vector<16x32xf32> -> vector<16x32xf32>
    %c1_106 = arith.constant 1 : index
    %c295_107 = arith.constant 295 : index
    %c0_108 = arith.constant 0 : index
    %232 = vector.load %arg1[%c1_106, %c295_107, %c0_108] : memref<2x296x128xf32, #tpu.memory_space<vmem>>, vector<1x1x32xf32>
    %233 = vector.shape_cast %232 : vector<1x1x32xf32> to vector<1x32xf32>
    %234 = vector.broadcast %233 : vector<1x32xf32> to vector<16x32xf32>
    %235 = arith.addf %231, %234 : vector<16x32xf32>
    %236 = arith.addf %235, %219 : vector<16x32xf32>
    %237 = vector.shape_cast %236 : vector<16x32xf32> to vector<2x8x32xf32>
    %238 = vector.extract_strided_slice %237 {offsets = [0, 7, 0], sizes = [2, 1, 32], strides = [1, 1, 1]} : vector<2x8x32xf32> to vector<2x1x32xf32>
    %239 = vector.shape_cast %238 : vector<2x1x32xf32> to vector<2x32xf32>
    %c24 = arith.constant 24 : index
    %c0_109 = arith.constant 0 : index
    %240 = vector.load %arg2[%c24, %c0_109] : memref<288x128xf32, #tpu.memory_space<vmem>>, vector<32x32xf32>
    %cst_110 = arith.constant dense<0.000000e+00> : vector<2x32xf32>
    %241 = tpu.matmul %239, %240, %cst_110 {dimension_numbers = #tpu.dot_dimension_numbers<[1], [0], [0], [1], [0, 0, 1, 1], [], []>} : vector<2x32xf32>, vector<32x32xf32>, vector<2x32xf32> -> vector<2x32xf32>
    %c281 = arith.constant 281 : index
    %c0_111 = arith.constant 0 : index
    %242 = vector.load %arg2[%c281, %c0_111] : memref<288x128xf32, #tpu.memory_space<vmem>>, vector<1x32xf32>
    %243 = vector.broadcast %242 : vector<1x32xf32> to vector<2x32xf32>
    %244 = arith.addf %241, %243 : vector<2x32xf32>
    %cst_112 = arith.constant 0.000000e+00 : f32
    %245 = vector.broadcast %cst_112 : f32 to vector<2x32xf32>
    %246 = arith.maximumf %244, %245 : vector<2x32xf32>
    %c56 = arith.constant 56 : index
    %c0_113 = arith.constant 0 : index
    %247 = vector.load %arg2[%c56, %c0_113] : memref<288x128xf32, #tpu.memory_space<vmem>>, vector<32x32xf32>
    %cst_114 = arith.constant dense<0.000000e+00> : vector<2x32xf32>
    %248 = tpu.matmul %246, %247, %cst_114 {dimension_numbers = #tpu.dot_dimension_numbers<[1], [0], [0], [1], [0, 0, 1, 1], [], []>} : vector<2x32xf32>, vector<32x32xf32>, vector<2x32xf32> -> vector<2x32xf32>
    %c282 = arith.constant 282 : index
    %c0_115 = arith.constant 0 : index
    %249 = vector.load %arg2[%c282, %c0_115] : memref<288x128xf32, #tpu.memory_space<vmem>>, vector<1x32xf32>
    %250 = vector.broadcast %249 : vector<1x32xf32> to vector<2x32xf32>
    %251 = arith.addf %248, %250 : vector<2x32xf32>
    %252 = vector.shape_cast %251 : vector<2x32xf32> to vector<2x1x32xf32>
    %c88 = arith.constant 88 : index
    %c0_116 = arith.constant 0 : index
    %253 = vector.load %arg2[%c88, %c0_116] : memref<288x128xf32, #tpu.memory_space<vmem>>, vector<32x32xf32>
    %cst_117 = arith.constant dense<0.000000e+00> : vector<2x32xf32>
    %254 = tpu.matmul %246, %253, %cst_117 {dimension_numbers = #tpu.dot_dimension_numbers<[1], [0], [0], [1], [0, 0, 1, 1], [], []>} : vector<2x32xf32>, vector<32x32xf32>, vector<2x32xf32> -> vector<2x32xf32>
    %c283 = arith.constant 283 : index
    %c0_118 = arith.constant 0 : index
    %255 = vector.load %arg2[%c283, %c0_118] : memref<288x128xf32, #tpu.memory_space<vmem>>, vector<1x32xf32>
    %256 = vector.broadcast %255 : vector<1x32xf32> to vector<2x32xf32>
    %257 = arith.addf %254, %256 : vector<2x32xf32>
    %258 = vector.shape_cast %257 : vector<2x32xf32> to vector<2x1x32xf32>
    %c120 = arith.constant 120 : index
    %c0_119 = arith.constant 0 : index
    %259 = vector.load %arg2[%c120, %c0_119] : memref<288x128xf32, #tpu.memory_space<vmem>>, vector<32x32xf32>
    %cst_120 = arith.constant dense<0.000000e+00> : vector<2x32xf32>
    %260 = tpu.matmul %246, %259, %cst_120 {dimension_numbers = #tpu.dot_dimension_numbers<[1], [0], [0], [1], [0, 0, 1, 1], [], []>} : vector<2x32xf32>, vector<32x32xf32>, vector<2x32xf32> -> vector<2x32xf32>
    %c284 = arith.constant 284 : index
    %c0_121 = arith.constant 0 : index
    %261 = vector.load %arg2[%c284, %c0_121] : memref<288x128xf32, #tpu.memory_space<vmem>>, vector<1x32xf32>
    %262 = vector.broadcast %261 : vector<1x32xf32> to vector<2x32xf32>
    %263 = arith.addf %260, %262 : vector<2x32xf32>
    %264 = vector.shape_cast %263 : vector<2x32xf32> to vector<2x1x32xf32>
    %c248 = arith.constant 248 : index
    %c0_122 = arith.constant 0 : index
    %265 = vector.load %arg2[%c248, %c0_122] : memref<288x128xf32, #tpu.memory_space<vmem>>, vector<32x32xf32>
    %266 = vector.shape_cast %252 : vector<2x1x32xf32> to vector<2x1x1x32xf32>
    %267 = vector.shape_cast %258 : vector<2x1x32xf32> to vector<1x2x1x32xf32>
    %268 = vector.broadcast %266 : vector<2x1x1x32xf32> to vector<2x2x1x32xf32>
    %269 = vector.broadcast %267 : vector<1x2x1x32xf32> to vector<2x2x1x32xf32>
    %270 = arith.mulf %268, %269 : vector<2x2x1x32xf32>
    %271 = vector.shape_cast %270 : vector<2x2x1x32xf32> to vector<4x32xf32>
    %cst_123 = arith.constant dense<0.000000e+00> : vector<4x32xf32>
    %272 = tpu.matmul %271, %265, %cst_123 {dimension_numbers = #tpu.dot_dimension_numbers<[1], [0], [0], [1], [0, 0, 1, 1], [], []>} : vector<4x32xf32>, vector<32x32xf32>, vector<4x32xf32> -> vector<4x32xf32>
    %273 = vector.shape_cast %272 : vector<4x32xf32> to vector<2x2x1x32xf32>
    %cst_124 = arith.constant 0.353553385 : f32
    %274 = vector.broadcast %cst_124 : f32 to vector<2x2x1x32xf32>
    %275 = arith.mulf %273, %274 : vector<2x2x1x32xf32>
    %cst_125 = arith.constant dense<0xFF800000> : vector<2x1x32xf32>
    %276 = vector.multi_reduction <maximumf>, %275, %cst_125 [1] : vector<2x2x1x32xf32> to vector<2x1x32xf32>
    %277 = vector.shape_cast %276 : vector<2x1x32xf32> to vector<2x1x1x32xf32>
    %278 = vector.broadcast %277 : vector<2x1x1x32xf32> to vector<2x2x1x32xf32>
    %279 = arith.subf %275, %278 : vector<2x2x1x32xf32>
    %280 = math.exp %279 : vector<2x2x1x32xf32>
    %cst_126 = arith.constant dense<0.000000e+00> : vector<2x1x32xf32>
    %281 = vector.multi_reduction <add>, %280, %cst_126 [1] : vector<2x2x1x32xf32> to vector<2x1x32xf32>
    %282 = vector.shape_cast %281 : vector<2x1x32xf32> to vector<2x1x1x32xf32>
    %283 = vector.broadcast %282 : vector<2x1x1x32xf32> to vector<2x2x1x32xf32>
    %284 = arith.divf %280, %283 : vector<2x2x1x32xf32>
    %285 = vector.extract_strided_slice %284 {offsets = [0, 0, 0, 0], sizes = [2, 1, 1, 32], strides = [1, 1, 1, 1]} : vector<2x2x1x32xf32> to vector<2x1x1x32xf32>
    %286 = vector.shape_cast %285 : vector<2x1x1x32xf32> to vector<2x1x32xf32>
    %287 = vector.extract_strided_slice %264 {offsets = [0, 0, 0], sizes = [1, 1, 32], strides = [1, 1, 1]} : vector<2x1x32xf32> to vector<1x1x32xf32>
    %288 = vector.shape_cast %287 : vector<1x1x32xf32> to vector<1x32xf32>
    %289 = vector.shape_cast %288 : vector<1x32xf32> to vector<1x1x32xf32>
    %290 = vector.broadcast %289 : vector<1x1x32xf32> to vector<2x1x32xf32>
    %291 = arith.mulf %286, %290 : vector<2x1x32xf32>
    %292 = vector.extract_strided_slice %284 {offsets = [0, 1, 0, 0], sizes = [2, 1, 1, 32], strides = [1, 1, 1, 1]} : vector<2x2x1x32xf32> to vector<2x1x1x32xf32>
    %293 = vector.shape_cast %292 : vector<2x1x1x32xf32> to vector<2x1x32xf32>
    %294 = vector.extract_strided_slice %264 {offsets = [1, 0, 0], sizes = [1, 1, 32], strides = [1, 1, 1]} : vector<2x1x32xf32> to vector<1x1x32xf32>
    %295 = vector.shape_cast %294 : vector<1x1x32xf32> to vector<1x32xf32>
    %296 = vector.shape_cast %295 : vector<1x32xf32> to vector<1x1x32xf32>
    %297 = vector.broadcast %296 : vector<1x1x32xf32> to vector<2x1x32xf32>
    %298 = arith.mulf %293, %297 : vector<2x1x32xf32>
    %299 = arith.addf %291, %298 : vector<2x1x32xf32>
    %300 = vector.shape_cast %299 : vector<2x1x32xf32> to vector<2x32xf32>
    %c152 = arith.constant 152 : index
    %c0_127 = arith.constant 0 : index
    %301 = vector.load %arg2[%c152, %c0_127] : memref<288x128xf32, #tpu.memory_space<vmem>>, vector<32x32xf32>
    %cst_128 = arith.constant dense<0.000000e+00> : vector<2x32xf32>
    %302 = tpu.matmul %300, %301, %cst_128 {dimension_numbers = #tpu.dot_dimension_numbers<[1], [0], [0], [1], [0, 0, 1, 1], [], []>} : vector<2x32xf32>, vector<32x32xf32>, vector<2x32xf32> -> vector<2x32xf32>
    %c285 = arith.constant 285 : index
    %c0_129 = arith.constant 0 : index
    %303 = vector.load %arg2[%c285, %c0_129] : memref<288x128xf32, #tpu.memory_space<vmem>>, vector<1x32xf32>
    %304 = vector.broadcast %303 : vector<1x32xf32> to vector<2x32xf32>
    %305 = arith.addf %302, %304 : vector<2x32xf32>
    %c184 = arith.constant 184 : index
    %c0_130 = arith.constant 0 : index
    %306 = vector.load %arg2[%c184, %c0_130] : memref<288x128xf32, #tpu.memory_space<vmem>>, vector<32x1xf32>
    %cst_131 = arith.constant dense<0.000000e+00> : vector<2x1xf32>
    %307 = tpu.matmul %305, %306, %cst_131 {dimension_numbers = #tpu.dot_dimension_numbers<[1], [0], [0], [1], [0, 0, 1, 1], [], []>} : vector<2x32xf32>, vector<32x1xf32>, vector<2x1xf32> -> vector<2x1xf32>
    %c286 = arith.constant 286 : index
    %c0_132 = arith.constant 0 : index
    %308 = vector.load %arg2[%c286, %c0_132] : memref<288x128xf32, #tpu.memory_space<vmem>>, vector<1x1xf32>
    %309 = vector.broadcast %308 : vector<1x1xf32> to vector<2x1xf32>
    %310 = arith.addf %307, %309 : vector<2x1xf32>
    %311 = arith.negf %310 : vector<2x1xf32>
    %312 = math.exp %311 : vector<2x1xf32>
    %cst_133 = arith.constant 1.000000e+00 : f32
    %313 = vector.broadcast %cst_133 : f32 to vector<2x1xf32>
    %314 = arith.addf %313, %312 : vector<2x1xf32>
    %315 = arith.divf %313, %314 : vector<2x1xf32>
    %c0_134 = arith.constant 0 : index
    %c0_135 = arith.constant 0 : index
    %316 = vector.load %arg3[%c0_134, %c0_135] : memref<2x128xf32, #tpu.memory_space<vmem>>, vector<2x32xf32>
    tpu.vector_store %arg3[%c0_134, %c0_135], %239 {strides = array<i32>} : memref<2x128xf32, #tpu.memory_space<vmem>>, vector<2x32xf32>,
    %c0_136 = arith.constant 0 : index
    %c32_137 = arith.constant 32 : index
    %317 = vector.load %arg3[%c0_136, %c32_137] : memref<2x128xf32, #tpu.memory_space<vmem>>, vector<2x1xf32>
    tpu.vector_store %arg3[%c0_136, %c32_137], %315 {strides = array<i32>} : memref<2x128xf32, #tpu.memory_space<vmem>>, vector<2x1xf32>,
    return
  }
}

</mosaic_0001>

<bundles_post_ra>
// kernel: unimodal_forward.1
= control target key start
LH: loop header
LB: loop body
LE: loop exit
PB: predicated region body
PF: predicated region fallthrough
CT: control target
= control target key end

     0   :  { %8 = vsyncpa [#allocation3], 0  ;;  %s3252_s0 = inlined_call_operand.vmem [shape: f32[16,16], index: 0, kind: input, shape index: {}]   ;;  %s3253_s1 = inlined_call_operand.hbm [shape: f32[2,296,128], index: 1, kind: input, shape index: {}]   ;;  %s3254_s2 = inlined_call_operand.hbm [shape: f32[288,128], index: 2, kind: input, shape index: {}]   ;;  %s3255_s3 = inlined_call_operand.vmem [shape: f32[2,128], index: 3, kind: output, shape index: {}]  }
   0x1   :  { %9 = vsyncpa [#allocation5], 0  ;;  %s3008_s12 = smov [#allocation2]  }
   0x2   :  { %s17_s13 = sshll.u32 %s3008_s12, 4  ;;  %s18_s13 = int_to_ptr.vmem [resolvable:$true] %s17_s13 }
   0x3   :  { %s2972_s14 = scalar_lea.vmem %s18_s13, 9472  ;;  %p2977_p1 = scmp.lt.s32.totalorder %s18_s13, %s18_s13 }
   0x4   :  { %p2973_p0 = scmp.ne.s32.totalorder %s18_s13, %s2972_s14  ;;  %p2978_p2 = scmp.lt.s32.totalorder %s2972_s14, %s2972_s14 }
   0x6   :  { %p2979_p3 = por %p2978_p2, %p2977_p1 }
   0x8   :  { %p2980_p4 = pnand %p2979_p3, %p2973_p0 }
   0xa   :  { %2983 = shalt.err (!%p2980_p4)
}
   0xb   :  { %s3009_s15 = smov 128   ;;  %s3010_s16 = smov 8  }
   0xc   :  { %23 = dma.hbm_to_vmem [thread:$0]  %s3253_s1, 9472, %s18_s13, [#allocation3], %s3009_s15, %s3009_s15, %s3010_s16  }
   0xd   :  { %s3011_s19 = smov [#allocation4]  }
   0xe   :  { %s29_s20 = sshll.u32 %s3011_s19, 4  ;;  %s30_s20 = int_to_ptr.vmem [resolvable:$true] %s29_s20 }
   0xf   :  { %s2992_s21 = scalar_lea.vmem %s30_s20, 4608  ;;  %p2997_p6 = scmp.lt.s32.totalorder %s30_s20, %s30_s20 }
  0x10   :  { %p2993_p5 = scmp.ne.s32.totalorder %s30_s20, %s2992_s21  ;;  %p2998_p7 = scmp.lt.s32.totalorder %s2992_s21, %s2992_s21 }
  0x12   :  { %p2999_p8 = por %p2998_p7, %p2997_p6 }
  0x14   :  { %p3000_p9 = pnand %p2999_p8, %p2993_p5 }
  0x16   :  { %3003 = shalt.err (!%p3000_p9)
}
  0x17   :  { %35 = dma.hbm_to_vmem [thread:$0]  %s3254_s2, 4608, %s30_s20, [#allocation5], %s3009_s15, %s3009_s15, %s3010_s16  }
  0x18   :  { %3004 = dma.done.wait [#allocation3], 9472  }
  0x19   :  { %3005 = vsyncadd [#allocation3], 4294957824 }
  0x1a   :  { %3006 = dma.done.wait [#allocation5], 4608  }
  0x1b   :  { %3007 = vsyncadd [#allocation5], 4294962688  ;;  %vm51_vm0 = vcmask 130048   ;;  %v43_v0 = vld [vmem:[#allocation4 + $0x8] sm:$0xff]  ;;  %v42_v1 = vld [vmem:[#allocation4] sm:$0xff]  ;;  %vm151_vm1 = vcmask 261120  }
  0x1c   :  { %v45_v2 = vld [vmem:[%s3252_s0] sm:$0xff]  ;;  %2608 = vmatprep.subr.mxu0 %v43_v0  ;;  %v46_v3 = vld [vmem:[%s3252_s0 + $0x8] sm:$0xff]  ;;  %v145_v4 = vld [vmem:[#allocation2 + $0x18] sm:$0xff]  ;;  %vm3013_vm10 = vmmov 0   ;;  %vm2156_vm11 = vcmask 253952   ;;  %vm2381_vm12 = vcmask 261127  }
  0x1d   :  { %2612 = vmatprep.mubr.msk.f32.mxu0 %vm51_vm0, %v45_v2  ;;  %2609 = vmatpush3.msra.mxu0 %v43_v0  ;;  %v236_v5 = vld [vmem:[#allocation2 + $0x38] sm:$0xff]  ;;  %v144_v6 = vld [vmem:[#allocation2 + $0x10] sm:$0xff]  ;;  %v143_v8 = vld [vmem:[#allocation2 + $0x8] sm:$0xff]  ;;  %vm1628_vm13 = vcmask 1041409   ;;  %s3015_s29 = smov 32   ;;  %vm2388_vm15 = vcmask 263424  }
  0x1e   :  { %2610 = vmatprep.subr.mxu0 %v42_v1  ;;  %2615 = vmatprep.subr.mxu1 %v145_v4  ;;  %v235_v7 = vld [vmem:[#allocation2 + $0x30] sm:$0xff]  ;;  %v234_v9 = vld [vmem:[#allocation2 + $0x28] sm:$0xff]  ;;  %v142_v10 = vld [vmem:[#allocation2] sm:$0xff] }
  0x1f   :  { %2611 = vmatpush3.msra.mxu0 %v42_v1  ;;  %2616 = vmatpush3.msra.mxu1 %v145_v4  ;;  %v233_v11 = vld [vmem:[#allocation2 + $0x20] sm:$0xff]  ;;  %v320_v12 = vld [vmem:[#allocation2 + $0x58] sm:$0xff]  ;;  %v2396_v13 = vld [vmem:[#allocation4 + $0x118] ss:$0 sm:$0xff] }
  0x20   :  { %2613 = vmatmul.mubr.msk.f32.vlgmr.msra.gmra.mxu0 %vm51_vm0, %v46_v3  ;;  %2626 = vmatprep.subr.mxu0 %v236_v5  ;;  %v135_v19 = vld [vmem:[#allocation4 + $0x10] sm:$0xff]  ;;  %v319_v23 = vld [vmem:[#allocation2 + $0x50] sm:$0xff]  ;;  %v318_v24 = vld [vmem:[#allocation2 + $0x48] sm:$0xff] }
  0x21   :  { %2617 = vmatprep.subr.mxu1 %v144_v6  ;;  %2627 = vmatpush3.msra.mxu0 %v236_v5  ;;  %v317_v25 = vld [vmem:[#allocation2 + $0x40] sm:$0xff]  ;;  %v3068_v27 = vld [vmem:[#allocation4 + $0xe8] sm:$0xff]  ;;  %v3072_v28 = vld [vmem:[#allocation4 + $0xe0] sm:$0xff] }
  0x22   :  { %2618 = vmatpush3.msra.mxu1 %v144_v6  ;;  %2628 = vmatprep.subr.mxu0 %v235_v7  ;;  %v3064_v26 = vld [vmem:[#allocation4 + $0xf0] sm:$0xff]  ;;  %v3075_v29 = vld [vmem:[#allocation4 + $0xd8] sm:$0xff]  ;;  %v545_v44 = vld [vmem:[#allocation2 + $0x78] sm:$0xff] }
  0x23   :  { %2619 = vmatprep.subr.mxu1 %v143_v8  ;;  %2629 = vmatpush3.msra.mxu0 %v235_v7  ;;  %v2402_v32 = vld [vmem:[#allocation2 + $0x121] ss:$0 sm:$0xff]  ;;  %v2399_v33 = vld [vmem:[#allocation2 + $0x120] ss:$0 sm:$0xff]  ;;  %v544_v45 = vld [vmem:[#allocation2 + $0x70] sm:$0xff] }
  0x24   :  { %2620 = vmatpush3.msra.mxu1 %v143_v8  ;;  %2630 = vmatprep.subr.mxu0 %v234_v9  ;;  %v543_v46 = vld [vmem:[#allocation2 + $0x68] sm:$0xff]  ;;  %v542_v47 = vld [vmem:[#allocation2 + $0x60] sm:$0xff] }
  0x25   :  { %2621 = vmatprep.subr.mxu1 %v142_v10  ;;  %2631 = vmatpush3.msra.mxu0 %v234_v9 }
  0x26   :  { %2622 = vmatpush3.msra.mxu1 %v142_v10  ;;  %2632 = vmatprep.subr.mxu0 %v233_v11 }
  0x27   :  { %2633 = vmatpush3.msra.mxu0 %v233_v11  ;;  %2637 = vmatprep.subr.mxu1 %v320_v12 }
  0x28   :  { %2648 = vmatprep.subr.mxu0 %v3064_v26 }
  0xe0   :  { %v2614_v14 = vpop.f32.mrf.mxu0 }
  0xe1   :  { %v130_v15 = vadd.f32 %v2614_v14, %v2396_v13 }
  0xe2   :  { %v124_v16 = vpop.f32.mrf.mxu0 }
  0xe3   :  { %v125_v17 = vadd.f32 %v2396_v13, %v124_v16  ;;  %v134_v18 = vmax.f32 %v130_v15, 0.0 }
  0xe5   :  { %v133_v20 = vmax.f32 %v125_v17, 0.0  ;;  %v3050_v22 = vadd.f32 %v135_v19, %v134_v18  ;;  %v2405_v17 = vld [vmem:[#allocation2 + $0x122] ss:$0 sm:$0xff] }
  0xe7   :  { %v3048_v21 = vadd.f32 %v135_v19, %v133_v20 }
  0xe9   :  { %2623 = vmatprep.mubr.msk.f32.mxu1 %vm151_vm1, %v3048_v21  ;;  %2634 = vmatprep.mubr.msk.f32.mxu0 %vm151_vm1, %v3048_v21 }
  0xea   :  { %2624 = vmatmul.mubr.msk.f32.vlgmr.msra.gmra.mxu1 %vm151_vm1, %v3050_v22  ;;  %2635 = vmatmul.mubr.msk.f32.vlgmr.msra.gmra.mxu0 %vm151_vm1, %v3050_v22 }
  0xeb   :  { %2638 = vmatpush3.msra.mxu1 %v320_v12  ;;  %2645 = vmatprep.mubr.msk.f32.mxu1 %vm151_vm1, %v3048_v21 }
  0xec   :  { %2639 = vmatprep.subr.mxu1 %v319_v23  ;;  %2649 = vmatpush3.msra.mxu0 %v3064_v26 }
  0xed   :  { %2640 = vmatpush3.msra.mxu1 %v319_v23  ;;  %2650 = vmatprep.subr.mxu0 %v3068_v27 }
  0xee   :  { %2641 = vmatprep.subr.mxu1 %v318_v24  ;;  %2651 = vmatpush3.msra.mxu0 %v3068_v27 }
  0xef   :  { %2642 = vmatpush3.msra.mxu1 %v318_v24  ;;  %2652 = vmatprep.subr.mxu0 %v3072_v28 }
  0xf0   :  { %2643 = vmatprep.subr.mxu1 %v317_v25  ;;  %2653 = vmatpush3.msra.mxu0 %v3072_v28 }
  0xf1   :  { %2644 = vmatpush3.msra.mxu1 %v317_v25  ;;  %2654 = vmatprep.subr.mxu0 %v3075_v29 }
  0xf2   :  { %2646 = vmatmul.mubr.msk.f32.vlgmr.msra.gmra.mxu1 %vm151_vm1, %v3050_v22  ;;  %2655 = vmatpush3.msra.mxu0 %v3075_v29 }
  0xf3   :  { %2662 = vmatprep.subr.mxu1 %v545_v44 }
  0xf4   :  { %2663 = vmatpush3.msra.mxu1 %v545_v44 }
  0xf5   :  { %2664 = vmatprep.subr.mxu1 %v544_v45 }
  0xf6   :  { %2665 = vmatpush3.msra.mxu1 %v544_v45 }
  0xf7   :  { %2666 = vmatprep.subr.mxu1 %v543_v46 }
  0xf8   :  { %2667 = vmatpush3.msra.mxu1 %v543_v46 }
  0xf9   :  { %2668 = vmatprep.subr.mxu1 %v542_v47 }
  0xfa   :  { %2669 = vmatpush3.msra.mxu1 %v542_v47 }
 0x1aa   :  { %v2625_v30 = vpop.f32.mrf.mxu1  ;;  %v2636_v31 = vpop.f32.mrf.mxu0 }
 0x1ab   :  { %v314_v36 = vadd.f32 %v2636_v31, %v2402_v32  ;;  %v230_v39 = vadd.f32 %v2625_v30, %v2399_v33 }
 0x1ac   :  { %v224_v34 = vpop.f32.mrf.mxu1  ;;  %v308_v35 = vpop.f32.mrf.mxu0 }
 0x1ad   :  { %v225_v37 = vadd.f32 %v2399_v33, %v224_v34  ;;  %v309_v38 = vadd.f32 %v2402_v32, %v308_v35  ;;  %v404_v43 = vmul.f32 %v314_v36, %v230_v39 }
 0x1af   :  { %v402_v40 = vmul.f32 %v314_v36, %v225_v37  ;;  %v401_v41 = vmul.f32 %v309_v38, %v225_v37  ;;  %v403_v42 = vmul.f32 %v309_v38, %v230_v39 }
 0x1b1   :  { %2656 = vmatprep.mubr.msk.f32.mxu0 %vm151_vm1, %v401_v41 }
 0x1b2   :  { %2657 = vmatmul.mubr.msk.f32.vlgmr.msra.gmra.mxu0 %vm151_vm1, %v402_v40  ;;  %v2647_v16 = vpop.f32.mrf.mxu1  ;;  %v2412_v40 = vld [vmem:[#allocation2 + $0x123] ss:$0 sm:$0xff] }
 0x1b3   :  { %2659 = vmatprep.mubr.msk.f32.mxu0 %vm151_vm1, %v403_v42  ;;  %v398_v20 = vadd.f32 %v2647_v16, %v2405_v17 }
 0x1b4   :  { %v392_v18 = vpop.f32.mrf.mxu1 }
 0x1b5   :  { %v393_v23 = vadd.f32 %v2405_v17, %v392_v18 }
 0x1b6   :  { %2660 = vmatmul.mubr.msk.f32.gmra.mxu0 %vm151_vm1, %v404_v43 }
 0x272   :  { %v2658_v48 = vpop.f32.mrf.mxu0 }
 0x273   :  { %v503_v49 = vmul.f32 0.35355338, %v2658_v48 }
 0x274   :  { %v483_v50 = vpop.f32.mrf.mxu0 }
 0x275   :  { %v502_v51 = vmul.f32 0.35355338, %v483_v50  ;;  %v507_v53 = vsel %vm151_vm1, %v503_v49, -inf }
 0x276   :  { %v2661_v52 = vpop.f32.mrf.mxu0 }
 0x277   :  { %v506_v54 = vsel %vm151_vm1, %v502_v51, -inf  ;;  %v505_v55 = vmul.f32 0.35355338, %v2661_v52 }
 0x278   :  { %v508_v56 = vmax.f32 %v506_v54, %v507_v53  ;;  %v493_v57 = vpop.f32.mrf.mxu0 }
 0x279   :  { %v504_v58 = vmul.f32 0.35355338, %v493_v57  ;;  %v510_v61 = vsel %vm151_vm1, %v505_v55, -inf  ;;  %v691_v57 = vld [vmem:[#allocation2 + $0x90] sm:$0xff] }
 0x27a   :  { %v512_v59 = vsub.f32 %v502_v51, %v508_v56  ;;  %v513_v60 = vsub.f32 %v503_v49, %v508_v56  ;;  %v692_v56 = vld [vmem:[#allocation2 + $0x98] sm:$0xff] }
 0x27b   :  { %v509_v62 = vsel %vm151_vm1, %v504_v58, -inf  ;;  %2673 = vmatprep.subr.mxu0 %v692_v56 }
 0x27c   :  { %v516_v63 = vmul.f32 1.442695, %v512_v59  ;;  %v518_v0 = vmul.f32 1.442695, %v513_v60  ;;  %v511_v1 = vmax.f32 %v509_v62, %v510_v61  ;;  %2674 = vmatpush3.msra.mxu0 %v692_v56  ;;  %v689_v59 = vld [vmem:[#allocation2 + $0x80] sm:$0xff]  ;;  %v796_v60 = vld [vmem:[#allocation2 + $0x118] sm:$0xff] }
 0x27d   :  { %2675 = vmatprep.subr.mxu0 %v691_v57  ;;  %v795_v61 = vld [vmem:[#allocation2 + $0x110] sm:$0xff]  ;;  %2684 = vmatprep.subr.mxu1 %v796_v60  ;;  %v794_v62 = vld [vmem:[#allocation2 + $0x108] sm:$0xff]  ;;  %v2420_v56 = vld [vmem:[#allocation2 + $0x127] ss:$0 sm:$0xff] }
 0x27e   :  { %2908 = vpow2.f32 %v516_v63  ;;  %v514_v2 = vsub.f32 %v504_v58, %v511_v1  ;;  %v515_v3 = vsub.f32 %v505_v55, %v511_v1  ;;  %v690_v58 = vld [vmem:[#allocation2 + $0x88] sm:$0xff]  ;;  %2676 = vmatpush3.msra.mxu0 %v691_v57  ;;  %v793_v63 = vld [vmem:[#allocation2 + $0x100] sm:$0xff]  ;;  %v791_v1 = vld [vmem:[#allocation2 + $0xf0] sm:$0xff] }
 0x27f   :  { %2910 = vpow2.f32 %v518_v0  ;;  %2677 = vmatprep.subr.mxu0 %v690_v58  ;;  %v792_v0 = vld [vmem:[#allocation2 + $0xf8] sm:$0xff] }
 0x280   :  { %v520_v4 = vmul.f32 1.442695, %v514_v2  ;;  %v522_v5 = vmul.f32 1.442695, %v515_v3  ;;  %2678 = vmatpush3.msra.mxu0 %v690_v58  ;;  %v790_v2 = vld [vmem:[#allocation2 + $0xe8] sm:$0xff]  ;;  %v789_v3 = vld [vmem:[#allocation2 + $0xe0] sm:$0xff] }
 0x281   :  { %2679 = vmatprep.subr.mxu0 %v689_v59 }
 0x282   :  { %2912 = vpow2.f32 %v520_v4  ;;  %2680 = vmatpush3.msra.mxu0 %v689_v59  ;;  %v788_v4 = vld [vmem:[#allocation2 + $0xd8] sm:$0xff] }
 0x283   :  { %2914 = vpow2.f32 %v522_v5  ;;  %v787_v5 = vld [vmem:[#allocation2 + $0xd0] sm:$0xff] }
 0x28b   :  { %v2909_v6 = vpop.eup %2908 }
 0x28c   :  { %v2911_v7 = vpop.eup %2910  ;;  %v524_v8 = vsel %vm151_vm1, %v2909_v6, 0.0 }
 0x28d   :  { %v525_v9 = vsel %vm151_vm1, %v2911_v7, 0.0 }
 0x28e   :  { %v526_v10 = vadd.f32 %v525_v9, %v524_v8 }
 0x28f   :  { %v2913_v11 = vpop.eup %2912 }
 0x290   :  { %v2915_v12 = vpop.eup %2914  ;;  %2916 = vrcp.f32 %v526_v10  ;;  %v527_v13 = vsel %vm151_vm1, %v2913_v11, 0.0 }
 0x291   :  { %v528_v14 = vsel %vm151_vm1, %v2915_v12, 0.0 }
 0x292   :  { %v529_v15 = vadd.f32 %v528_v14, %v527_v13 }
 0x294   :  { %2918 = vrcp.f32 %v529_v15 }
 0x29d   :  { %v2917_v19 = vpop.eup %2916 }
 0x29e   :  { %v531_v24 = vmul.f32 %v2917_v19, %v2909_v6  ;;  %v532_v25 = vmul.f32 %v2917_v19, %v2911_v7  ;;  %v786_v6 = vld [vmem:[#allocation2 + $0xc8] sm:$0xff]  ;;  %v785_v7 = vld [vmem:[#allocation2 + $0xc0] sm:$0xff] }
 0x2a0   :  { %v536_v30 = vmul.f32 %v531_v24, %v393_v23  ;;  %v538_v31 = vmul.f32 %v532_v25, %v398_v20 }
 0x2a1   :  { %v2919_v32 = vpop.eup %2918 }
 0x2a2   :  { %v540_v33 = vadd.f32 %v538_v31, %v536_v30  ;;  %v534_v34 = vmul.f32 %v2919_v32, %v2913_v11  ;;  %v535_v35 = vmul.f32 %v2919_v32, %v2915_v12  ;;  %v2415_v31 = vld [vmem:[#allocation2 + $0x124] ss:$0 sm:$0xff] }
 0x2a4   :  { %2670 = vmatprep.mubr.msk.f32.mxu1 %vm151_vm1, %v540_v33  ;;  %v537_v36 = vmul.f32 %v534_v34, %v393_v23  ;;  %v539_v37 = vmul.f32 %v535_v35, %v398_v20  ;;  %v2416_v33 = vld [vmem:[#allocation2 + $0x125] ss:$0 sm:$0xff] }
 0x2a6   :  { %v541_v38 = vadd.f32 %v539_v37, %v537_v36 }
 0x2a8   :  { %2671 = vmatmul.mubr.msk.f32.vlgmr.msra.gmra.mxu1 %vm151_vm1, %v541_v38 }
 0x2a9   :  { %2685 = vmatpush3.msra.mxu1 %v796_v60 }
 0x2aa   :  { %2686 = vmatprep.subr.mxu1 %v795_v61 }
 0x2ab   :  { %2687 = vmatpush3.msra.mxu1 %v795_v61 }
 0x2ac   :  { %2688 = vmatprep.subr.mxu1 %v794_v62 }
 0x2ad   :  { %2689 = vmatpush3.msra.mxu1 %v794_v62 }
 0x2ae   :  { %2690 = vmatprep.subr.mxu1 %v793_v63 }
 0x2af   :  { %2691 = vmatpush3.msra.mxu1 %v793_v63  ;;  %v972_v63 = vld [vmem:[#allocation2 + $0x158] sm:$0xff] }
 0x2b0   :  { %2692 = vmatprep.subr.mxu1 %v792_v0 }
 0x2b1   :  { %2693 = vmatpush3.msra.mxu1 %v792_v0  ;;  %v971_v0 = vld [vmem:[#allocation2 + $0x150] sm:$0xff] }
 0x2b2   :  { %2694 = vmatprep.subr.mxu1 %v791_v1 }
 0x2b3   :  { %2695 = vmatpush3.msra.mxu1 %v791_v1  ;;  %v970_v1 = vld [vmem:[#allocation2 + $0x148] sm:$0xff] }
 0x2b4   :  { %2696 = vmatprep.subr.mxu1 %v790_v2 }
 0x2b5   :  { %2697 = vmatpush3.msra.mxu1 %v790_v2  ;;  %v1057_v2 = vld [vmem:[#allocation2 + $0x180] sm:$0xff] }
 0x2b6   :  { %2698 = vmatprep.subr.mxu1 %v789_v3 }
 0x2b7   :  { %2699 = vmatpush3.msra.mxu1 %v789_v3  ;;  %v1056_v3 = vld [vmem:[#allocation2 + $0x178] sm:$0xff] }
 0x2b8   :  { %2700 = vmatprep.subr.mxu1 %v788_v4 }
 0x2b9   :  { %2701 = vmatpush3.msra.mxu1 %v788_v4  ;;  %v1055_v4 = vld [vmem:[#allocation2 + $0x170] sm:$0xff] }
 0x2ba   :  { %2702 = vmatprep.subr.mxu1 %v787_v5 }
 0x2bb   :  { %2703 = vmatpush3.msra.mxu1 %v787_v5  ;;  %v1054_v5 = vld [vmem:[#allocation2 + $0x168] sm:$0xff] }
 0x2bc   :  { %2704 = vmatprep.subr.mxu1 %v786_v6 }
 0x2bd   :  { %2705 = vmatpush3.msra.mxu1 %v786_v6 }
 0x2be   :  { %2706 = vmatprep.subr.mxu1 %v785_v7 }
 0x2bf   :  { %2707 = vmatpush3.msra.mxu1 %v785_v7 }
 0x368   :  { %v2672_v39 = vpop.f32.mrf.mxu1 }
 0x369   :  { %v629_v43 = vadd.f32 %v2672_v39, %v2412_v40 }
 0x36a   :  { %v623_v41 = vpop.f32.mrf.mxu1 }
 0x36b   :  { %v624_v42 = vadd.f32 %v2412_v40, %v623_v41  ;;  %v635_v45 = vsel %vm151_vm1, %v629_v43, 0.0 }
 0x36d   :  { %v632_v44 = vsel %vm151_vm1, %v624_v42, 0.0 }
 0x36e   :  { %633 = vadd.xlane.f32.xlu0 %v632_v44  ;;  %v782_v44 = vld [vmem:[#allocation2 + $0xa8] sm:$0xff] }
 0x372   :  { %636 = vadd.xlane.f32.xlu0 %v635_v45  ;;  %v781_v45 = vld [vmem:[#allocation2 + $0xa0] sm:$0xff] }
 0x3f7   :  { %v634_v46 = vpop.xlane.xlu0 %633 }
 0x3f8   :  { %v639_v47 = vmul.f32 0.03125, %v634_v46  ;;  %v2417_v46 = vld [vmem:[#allocation2 + $0x126] ss:$0 sm:$0xff] }
 0x3fa   :  { %v3096_v48 = vsub.f32 %v624_v42, %v639_v47  ;;  %v784_v42 = vld [vmem:[#allocation2 + $0xb8] sm:$0xff] }
 0x3fb   :  { %v637_v49 = vpop.xlane.xlu0 %636  ;;  %2708 = vmatprep.subr.mxu1 %v784_v42 }
 0x3fc   :  { %v640_v50 = vmul.f32 0.03125, %v637_v49  ;;  %v643_v51 = vmul.f32 %v3096_v48, %v3096_v48  ;;  %2709 = vmatpush3.msra.mxu1 %v784_v42 }
 0x3fe   :  { %v3100_v52 = vsub.f32 %v629_v43, %v640_v50  ;;  %v645_v53 = vsel %vm151_vm1, %v643_v51, 0.0  ;;  %v783_v43 = vld [vmem:[#allocation2 + $0xb0] sm:$0xff] }
 0x3ff   :  { %646 = vadd.xlane.f32.xlu1 %v645_v53  ;;  %2710 = vmatprep.subr.mxu1 %v783_v43  ;;  %v881_v53 = vld [vmem:[#allocation2 + $0x130] sm:$0xff] }
 0x400   :  { %v644_v54 = vmul.f32 %v3100_v52, %v3100_v52  ;;  %2711 = vmatpush3.msra.mxu1 %v783_v43 }
 0x401   :  { %2712 = vmatprep.subr.mxu1 %v782_v44 }
 0x402   :  { %v648_v55 = vsel %vm151_vm1, %v644_v54, 0.0  ;;  %2713 = vmatpush3.msra.mxu1 %v782_v44  ;;  %v880_v54 = vld [vmem:[#allocation2 + $0x128] sm:$0xff] }
 0x403   :  { %649 = vadd.xlane.f32.xlu1 %v648_v55  ;;  %2714 = vmatprep.subr.mxu1 %v781_v45  ;;  %v973_v55 = vld [vmem:[#allocation2 + $0x160] sm:$0xff] }
 0x404   :  { %2715 = vmatpush3.msra.mxu1 %v781_v45 }
 0x488   :  { %v647_v8 = vpop.xlane.xlu1 %646 }
 0x489   :  { %v651_v9 = vmul.f32 0.03125, %v647_v8  ;;  %v2424_v8 = vld [vmem:[#allocation2 + $0x249] ss:$0 sm:$0xff] }
 0x48b   :  { %v653_v10 = vadd.f32 1e-05, %v651_v9 }
 0x48c   :  { %v650_v11 = vpop.xlane.xlu1 %649 }
 0x48d   :  { %2920 = vrsqrt.f32 %v653_v10  ;;  %v652_v12 = vmul.f32 0.03125, %v650_v11  ;;  %vm657_vm2 = vcmp.eq.f32.partialorder %v653_v10, inf  ;;  %v660_v16 = vand.u32 2147483648, %v653_v10 }
 0x48e   :  { %vm659_vm3 = vcmp.eq.f32.partialorder %v653_v10, 0.0 }
 0x48f   :  { %v654_v13 = vadd.f32 1e-05, %v652_v12 }
 0x491   :  { %2922 = vrsqrt.f32 %v654_v13  ;;  %vm664_vm4 = vcmp.eq.f32.partialorder %v654_v13, inf  ;;  %v667_v23 = vand.u32 2147483648, %v654_v13  ;;  %vm666_vm5 = vcmp.eq.f32.partialorder %v654_v13, 0.0 }
 0x49a   :  { %v2921_v14 = vpop.eup %2920 }
 0x49b   :  { %v656_v15 = vmul.f32 %v2921_v14, %v653_v10 }
 0x49d   :  { %v658_v17 = vsel %vm657_vm2, %v653_v10, %v656_v15  ;;  %v2421_v10 = vld [vmem:[#allocation2 + $0x248] ss:$0 sm:$0xff] }
 0x49e   :  { %v661_v18 = vsel %vm659_vm3, %v660_v16, %v658_v17  ;;  %v2923_v19 = vpop.eup %2922  ;;  %v1281_v17 = vld [vmem:[#allocation2 + $0x198] sm:$0xff] }
 0x49f   :  { %2924 = vrcp.f32 %v661_v18  ;;  %v663_v20 = vmul.f32 %v2923_v19, %v654_v13  ;;  %v1280_v18 = vld [vmem:[#allocation2 + $0x190] sm:$0xff]  ;;  %v1279_v19 = vld [vmem:[#allocation2 + $0x188] sm:$0xff] }
 0x4a1   :  { %v665_v24 = vsel %vm664_vm4, %v654_v13, %v663_v20 }
 0x4a2   :  { %v668_v25 = vsel %vm666_vm5, %v667_v23, %v665_v24 }
 0x4a3   :  { %2926 = vrcp.f32 %v668_v25 }
 0x4ac   :  { %v2925_v30 = vpop.eup %2924 }
 0x4ad   :  { %v670_v32 = vmul.f32 %v2925_v30, %v3096_v48 }
 0x4af   :  { %v678_v34 = vmul.f32 %v2415_v31, %v670_v32 }
 0x4b0   :  { %v2927_v35 = vpop.eup %2926 }
 0x4b1   :  { %v685_v36 = vadd.f32 %v2416_v33, %v678_v34  ;;  %v672_v37 = vmul.f32 %v2927_v35, %v3100_v52  ;;  %v882_v52 = vld [vmem:[#allocation2 + $0x138] sm:$0xff] }
 0x4b3   :  { %v687_v38 = vadd.f32 %v685_v36, %v3048_v21  ;;  %v679_v39 = vmul.f32 %v2415_v31, %v672_v37  ;;  %v883_v21 = vld [vmem:[#allocation2 + $0x140] sm:$0xff] }
 0x4b4   :  { %2719 = vmatprep.subr.mxu0 %v883_v21 }
 0x4b5   :  { %2681 = vmatprep.mubr.msk.f32.mxu0 %vm151_vm1, %v687_v38  ;;  %v686_v40 = vadd.f32 %v2416_v33, %v679_v39 }
 0x4b7   :  { %v688_v41 = vadd.f32 %v686_v40, %v3050_v22 }
 0x4b9   :  { %2682 = vmatmul.mubr.msk.f32.vlgmr.msra.gmra.mxu0 %vm151_vm1, %v688_v41 }
 0x4ba   :  { %2720 = vmatpush3.msra.mxu0 %v883_v21 }
 0x4bb   :  { %2721 = vmatprep.subr.mxu0 %v882_v52 }
 0x4bc   :  { %2722 = vmatpush3.msra.mxu0 %v882_v52 }
 0x4bd   :  { %2723 = vmatprep.subr.mxu0 %v881_v53 }
 0x4be   :  { %2724 = vmatpush3.msra.mxu0 %v881_v53 }
 0x4bf   :  { %2725 = vmatprep.subr.mxu0 %v880_v54 }
 0x4c0   :  { %2726 = vmatpush3.msra.mxu0 %v880_v54 }
 0x4c1   :  { %2730 = vmatprep.subr.mxu0 %v973_v55 }
 0x579   :  { %v2683_v47 = vpop.f32.mrf.mxu0 }
 0x57a   :  { %v776_v22 = vadd.f32 %v2683_v47, %v2417_v46 }
 0x57b   :  { %v770_v48 = vpop.f32.mrf.mxu0 }
 0x57c   :  { %v771_v49 = vadd.f32 %v2417_v46, %v770_v48  ;;  %v780_v51 = vmax.f32 %v776_v22, 0.0 }
 0x57e   :  { %v779_v50 = vmax.f32 %v771_v49, 0.0 }
 0x580   :  { %2716 = vmatprep.mubr.f32.mxu1 %v779_v50 }
 0x581   :  { %2717 = vmatmul.mubr.f32.vlgmr.msra.gmra.mxu1 %v780_v51 }
 0x641   :  { %v2718_v57 = vpop.f32.mrf.mxu1 }
 0x642   :  { %v874_v58 = vadd.f32 %v2718_v57, %v2420_v56 }
 0x643   :  { %v868_v59 = vpop.f32.mrf.mxu1 }
 0x644   :  { %v869_v60 = vadd.f32 %v2420_v56, %v868_v59  ;;  %v3114_v62 = vadd.f32 %v874_v58, %v688_v41  ;;  %v2427_v58 = vld [vmem:[#allocation2 + $0x24a] ss:$0 sm:$0xff] }
 0x646   :  { %v3112_v61 = vadd.f32 %v869_v60, %v687_v38 }
 0x648   :  { %2727 = vmatprep.mubr.msk.f32.mxu0 %vm151_vm1, %v3112_v61 }
 0x649   :  { %2728 = vmatmul.mubr.msk.f32.vlgmr.msra.gmra.mxu0 %vm151_vm1, %v3114_v62 }
 0x64a   :  { %2731 = vmatpush3.msra.mxu0 %v973_v55  ;;  %2738 = vmatprep.mubr.msk.f32.mxu0 %vm151_vm1, %v3112_v61 }
 0x64b   :  { %2732 = vmatprep.subr.mxu0 %v972_v63 }
 0x64c   :  { %2733 = vmatpush3.msra.mxu0 %v972_v63 }
 0x64d   :  { %2734 = vmatprep.subr.mxu0 %v971_v0 }
 0x64e   :  { %2735 = vmatpush3.msra.mxu0 %v971_v0 }
 0x64f   :  { %2736 = vmatprep.subr.mxu0 %v970_v1 }
 0x650   :  { %2737 = vmatpush3.msra.mxu0 %v970_v1 }
 0x651   :  { %2739 = vmatmul.mubr.msk.f32.vlgmr.msra.gmra.mxu0 %vm151_vm1, %v3114_v62  ;;  %2741 = vmatprep.subr.mxu0 %v1057_v2 }
 0x652   :  { %2742 = vmatpush3.msra.mxu0 %v1057_v2  ;;  %2749 = vmatprep.mubr.msk.f32.mxu0 %vm151_vm1, %v3112_v61 }
 0x653   :  { %2743 = vmatprep.subr.mxu0 %v1056_v3 }
 0x654   :  { %2744 = vmatpush3.msra.mxu0 %v1056_v3 }
 0x655   :  { %2745 = vmatprep.subr.mxu0 %v1055_v4 }
 0x656   :  { %2746 = vmatpush3.msra.mxu0 %v1055_v4 }
 0x657   :  { %2747 = vmatprep.subr.mxu0 %v1054_v5 }
 0x658   :  { %2748 = vmatpush3.msra.mxu0 %v1054_v5 }
 0x659   :  { %2750 = vmatmul.mubr.msk.f32.vlgmr.msra.gmra.mxu0 %vm151_vm1, %v3114_v62  ;;  %2752 = vmatprep.subr.mxu0 %v3064_v26 }
 0x65a   :  { %2753 = vmatpush3.msra.mxu0 %v3064_v26 }
 0x65b   :  { %2754 = vmatprep.subr.mxu0 %v3068_v27 }
 0x65c   :  { %2755 = vmatpush3.msra.mxu0 %v3068_v27 }
 0x65d   :  { %2756 = vmatprep.subr.mxu0 %v3072_v28 }
 0x65e   :  { %2757 = vmatpush3.msra.mxu0 %v3072_v28 }
 0x65f   :  { %2758 = vmatprep.subr.mxu0 %v3075_v29 }
 0x660   :  { %2759 = vmatpush3.msra.mxu0 %v3075_v29  ;;  %v1282_v29 = vld [vmem:[#allocation2 + $0x1a0] sm:$0xff] }
 0x661   :  { %2766 = vmatprep.subr.mxu1 %v1282_v29 }
 0x662   :  { %2767 = vmatpush3.msra.mxu1 %v1282_v29 }
 0x663   :  { %2768 = vmatprep.subr.mxu1 %v1281_v17 }
 0x664   :  { %2769 = vmatpush3.msra.mxu1 %v1281_v17 }
 0x665   :  { %2770 = vmatprep.subr.mxu1 %v1280_v18 }
 0x666   :  { %2771 = vmatpush3.msra.mxu1 %v1280_v18 }
 0x667   :  { %2772 = vmatprep.subr.mxu1 %v1279_v19 }
 0x668   :  { %2773 = vmatpush3.msra.mxu1 %v1279_v19 }
 0x709   :  { %v2729_v6 = vpop.f32.mrf.mxu0 }
 0x70a   :  { %v967_v14 = vadd.f32 %v2729_v6, %v2421_v10 }
 0x70b   :  { %v961_v7 = vpop.f32.mrf.mxu0 }
 0x70c   :  { %v962_v26 = vadd.f32 %v2421_v10, %v961_v7 }
 0x711   :  { %v2740_v9 = vpop.f32.mrf.mxu0 }
 0x712   :  { %v1051_v11 = vadd.f32 %v2740_v9, %v2424_v8 }
 0x713   :  { %v1045_v12 = vpop.f32.mrf.mxu0 }
 0x714   :  { %v1046_v13 = vadd.f32 %v2424_v8, %v1045_v12  ;;  %v1139_v27 = vmul.f32 %v1051_v11, %v962_v26  ;;  %v1141_v28 = vmul.f32 %v1051_v11, %v967_v14  ;;  %v2434_v11 = vld [vmem:[#allocation2 + $0x24b] ss:$0 sm:$0xff] }
 0x716   :  { %v1138_v15 = vmul.f32 %v1046_v13, %v962_v26  ;;  %v1140_v16 = vmul.f32 %v1046_v13, %v967_v14 }
 0x718   :  { %2760 = vmatprep.mubr.msk.f32.mxu0 %vm151_vm1, %v1138_v15 }
 0x719   :  { %2761 = vmatmul.mubr.msk.f32.vlgmr.msra.gmra.mxu0 %vm151_vm1, %v1139_v27  ;;  %v2751_v20 = vpop.f32.mrf.mxu0 }
 0x71a   :  { %2763 = vmatprep.mubr.msk.f32.mxu0 %vm151_vm1, %v1140_v16  ;;  %v1135_v60 = vadd.f32 %v2751_v20, %v2427_v58 }
 0x71b   :  { %v1129_v23 = vpop.f32.mrf.mxu0 }
 0x71c   :  { %v1130_v63 = vadd.f32 %v2427_v58, %v1129_v23 }
 0x71d   :  { %2764 = vmatmul.mubr.msk.f32.gmra.mxu0 %vm151_vm1, %v1141_v28 }
 0x7d9   :  { %v2762_v24 = vpop.f32.mrf.mxu0 }
 0x7da   :  { %v1240_v25 = vmul.f32 0.35355338, %v2762_v24 }
 0x7db   :  { %v1220_v30 = vpop.f32.mrf.mxu0 }
 0x7dc   :  { %v1239_v31 = vmul.f32 0.35355338, %v1220_v30  ;;  %v1244_v33 = vsel %vm151_vm1, %v1240_v25, -inf  ;;  %v1428_v30 = vld [vmem:[#allocation2 + $0x1c0] sm:$0xff] }
 0x7dd   :  { %v2765_v32 = vpop.f32.mrf.mxu0  ;;  %2777 = vmatprep.subr.mxu0 %v1428_v30 }
 0x7de   :  { %v1243_v34 = vsel %vm151_vm1, %v1239_v31, -inf  ;;  %v1242_v35 = vmul.f32 0.35355338, %v2765_v32  ;;  %2778 = vmatpush3.msra.mxu0 %v1428_v30  ;;  %v1426_v32 = vld [vmem:[#allocation2 + $0x1b0] sm:$0xff] }
 0x7df   :  { %v1245_v36 = vmax.f32 %v1243_v34, %v1244_v33  ;;  %v1230_v37 = vpop.f32.mrf.mxu0  ;;  %v1425_v33 = vld [vmem:[#allocation2 + $0x1a8] sm:$0xff]  ;;  %v1532_v34 = vld [vmem:[#allocation2 + $0x240] sm:$0xff] }
 0x7e0   :  { %v1241_v38 = vmul.f32 0.35355338, %v1230_v37  ;;  %v1247_v41 = vsel %vm151_vm1, %v1242_v35, -inf  ;;  %2788 = vmatprep.subr.mxu1 %v1532_v34  ;;  %v1529_v37 = vld [vmem:[#allocation2 + $0x228] sm:$0xff] }
 0x7e1   :  { %v1249_v39 = vsub.f32 %v1239_v31, %v1245_v36  ;;  %v1250_v40 = vsub.f32 %v1240_v25, %v1245_v36  ;;  %v1427_v31 = vld [vmem:[#allocation2 + $0x1b8] sm:$0xff]  ;;  %v1530_v36 = vld [vmem:[#allocation2 + $0x230] sm:$0xff] }
 0x7e2   :  { %v1246_v42 = vsel %vm151_vm1, %v1241_v38, -inf  ;;  %2779 = vmatprep.subr.mxu0 %v1427_v31 }
 0x7e3   :  { %v1253_v43 = vmul.f32 1.442695, %v1249_v39  ;;  %v1255_v44 = vmul.f32 1.442695, %v1250_v40  ;;  %v1248_v45 = vmax.f32 %v1246_v42, %v1247_v41  ;;  %2780 = vmatpush3.msra.mxu0 %v1427_v31  ;;  %v1527_v39 = vld [vmem:[#allocation2 + $0x218] sm:$0xff]  ;;  %v1526_v40 = vld [vmem:[#allocation2 + $0x210] sm:$0xff] }
 0x7e4   :  { %2781 = vmatprep.subr.mxu0 %v1426_v32  ;;  %v1525_v41 = vld [vmem:[#allocation2 + $0x208] sm:$0xff]  ;;  %v1524_v42 = vld [vmem:[#allocation2 + $0x200] sm:$0xff] }
 0x7e5   :  { %2928 = vpow2.f32 %v1253_v43  ;;  %v1251_v21 = vsub.f32 %v1241_v38, %v1248_v45  ;;  %v1252_v46 = vsub.f32 %v1242_v35, %v1248_v45  ;;  %2782 = vmatpush3.msra.mxu0 %v1426_v32  ;;  %v1531_v35 = vld [vmem:[#allocation2 + $0x238] sm:$0xff]  ;;  %v1528_v38 = vld [vmem:[#allocation2 + $0x220] sm:$0xff]  ;;  %v1521_v45 = vld [vmem:[#allocation2 + $0x1e8] sm:$0xff] }
 0x7e6   :  { %2930 = vpow2.f32 %v1255_v44  ;;  %2783 = vmatprep.subr.mxu0 %v1425_v33  ;;  %v1523_v43 = vld [vmem:[#allocation2 + $0x1f8] sm:$0xff]  ;;  %v1522_v44 = vld [vmem:[#allocation2 + $0x1f0] sm:$0xff] }
 0x7e7   :  { %v1257_v47 = vmul.f32 1.442695, %v1251_v21  ;;  %v1259_v22 = vmul.f32 1.442695, %v1252_v46  ;;  %2784 = vmatpush3.msra.mxu0 %v1425_v33 }
 0x7e9   :  { %2932 = vpow2.f32 %v1257_v47 }
 0x7ea   :  { %2934 = vpow2.f32 %v1259_v22 }
 0x7f2   :  { %v2929_v48 = vpop.eup %2928 }
 0x7f3   :  { %v2931_v49 = vpop.eup %2930  ;;  %v1261_v50 = vsel %vm151_vm1, %v2929_v48, 0.0 }
 0x7f4   :  { %v1262_v51 = vsel %vm151_vm1, %v2931_v49, 0.0 }
 0x7f5   :  { %v1263_v52 = vadd.f32 %v1262_v51, %v1261_v50 }
 0x7f6   :  { %v2933_v53 = vpop.eup %2932 }
 0x7f7   :  { %v2935_v54 = vpop.eup %2934  ;;  %2936 = vrcp.f32 %v1263_v52  ;;  %v1264_v55 = vsel %vm151_vm1, %v2933_v53, 0.0 }
 0x7f8   :  { %v1265_v56 = vsel %vm151_vm1, %v2935_v54, 0.0 }
 0x7f9   :  { %v1266_v57 = vadd.f32 %v1265_v56, %v1264_v55 }
 0x7fb   :  { %2938 = vrcp.f32 %v1266_v57 }
 0x804   :  { %v2937_v59 = vpop.eup %2936 }
 0x805   :  { %v1268_v0 = vmul.f32 %v2937_v59, %v2929_v48  ;;  %v1269_v1 = vmul.f32 %v2937_v59, %v2931_v49 }
 0x807   :  { %v1273_v2 = vmul.f32 %v1268_v0, %v1130_v63  ;;  %v1275_v3 = vmul.f32 %v1269_v1, %v1135_v60 }
 0x808   :  { %v2939_v4 = vpop.eup %2938 }
 0x809   :  { %v1277_v5 = vadd.f32 %v1275_v3, %v1273_v2  ;;  %v1271_v6 = vmul.f32 %v2939_v4, %v2933_v53  ;;  %v1272_v7 = vmul.f32 %v2939_v4, %v2935_v54  ;;  %v2438_v4 = vld [vmem:[#allocation2 + $0x24d] ss:$0 sm:$0xff] }
 0x80b   :  { %2774 = vmatprep.mubr.msk.f32.mxu1 %vm151_vm1, %v1277_v5  ;;  %v1274_v8 = vmul.f32 %v1271_v6, %v1130_v63  ;;  %v1276_v9 = vmul.f32 %v1272_v7, %v1135_v60  ;;  %v2437_v63 = vld [vmem:[#allocation2 + $0x24c] ss:$0 sm:$0xff] }
 0x80d   :  { %v1278_v10 = vadd.f32 %v1276_v9, %v1274_v8 }
 0x80f   :  { %2775 = vmatmul.mubr.msk.f32.vlgmr.msra.gmra.mxu1 %vm151_vm1, %v1278_v10  ;;  %v1520_v10 = vld [vmem:[#allocation2 + $0x1e0] sm:$0xff] }
 0x810   :  { %2789 = vmatpush3.msra.mxu1 %v1532_v34 }
 0x811   :  { %2790 = vmatprep.subr.mxu1 %v1531_v35 }
 0x812   :  { %2791 = vmatpush3.msra.mxu1 %v1531_v35 }
 0x813   :  { %2792 = vmatprep.subr.mxu1 %v1530_v36 }
 0x814   :  { %2793 = vmatpush3.msra.mxu1 %v1530_v36  ;;  %v1706_v36 = vld [vmem:[#allocation4 + $0x50] sm:$0xff] }
 0x815   :  { %2794 = vmatprep.subr.mxu1 %v1529_v37 }
 0x816   :  { %2795 = vmatpush3.msra.mxu1 %v1529_v37 }
 0x817   :  { %2796 = vmatprep.subr.mxu1 %v1528_v38 }
 0x818   :  { %2797 = vmatpush3.msra.mxu1 %v1528_v38  ;;  %v1705_v38 = vld [vmem:[#allocation4 + $0x48] sm:$0xff] }
 0x819   :  { %2798 = vmatprep.subr.mxu1 %v1527_v39 }
 0x81a   :  { %2799 = vmatpush3.msra.mxu1 %v1527_v39  ;;  %v1704_v39 = vld [vmem:[#allocation4 + $0x40] sm:$0xff] }
 0x81b   :  { %2800 = vmatprep.subr.mxu1 %v1526_v40 }
 0x81c   :  { %2801 = vmatpush3.msra.mxu1 %v1526_v40  ;;  %v1703_v40 = vld [vmem:[#allocation4 + $0x38] sm:$0xff] }
 0x81d   :  { %2802 = vmatprep.subr.mxu1 %v1525_v41 }
 0x81e   :  { %2803 = vmatpush3.msra.mxu1 %v1525_v41  ;;  %v2443_v41 = vld [vmem:[#allocation4 + $0x119] ss:$0 sm:$0xff] }
 0x81f   :  { %2804 = vmatprep.subr.mxu1 %v1524_v42 }
 0x820   :  { %2805 = vmatpush3.msra.mxu1 %v1524_v42 }
 0x821   :  { %2806 = vmatprep.subr.mxu1 %v1523_v43 }
 0x822   :  { %2807 = vmatpush3.msra.mxu1 %v1523_v43 }
 0x823   :  { %2808 = vmatprep.subr.mxu1 %v1522_v44 }
 0x824   :  { %2809 = vmatpush3.msra.mxu1 %v1522_v44 }
 0x825   :  { %2810 = vmatprep.subr.mxu1 %v1521_v45 }
 0x826   :  { %2811 = vmatpush3.msra.mxu1 %v1521_v45 }
 0x827   :  { %2812 = vmatprep.subr.mxu1 %v1520_v10 }
 0x828   :  { %2813 = vmatpush3.msra.mxu1 %v1520_v10 }
 0x8cf   :  { %v2776_v12 = vpop.f32.mrf.mxu1 }
 0x8d0   :  { %v1366_v26 = vadd.f32 %v2776_v12, %v2434_v11  ;;  %v1518_v12 = vld [vmem:[#allocation2 + $0x1d0] sm:$0xff] }
 0x8d1   :  { %v1360_v13 = vpop.f32.mrf.mxu1 }
 0x8d2   :  { %v1361_v14 = vadd.f32 %v2434_v11, %v1360_v13  ;;  %v1372_v15 = vsel %vm151_vm1, %v1366_v26, 0.0  ;;  %v1519_v11 = vld [vmem:[#allocation2 + $0x1d8] sm:$0xff]  ;;  %v2439_v13 = vld [vmem:[#allocation2 + $0x24e] ss:$0 sm:$0xff] }
 0x8d3   :  { %1373 = vadd.xlane.f32.xlu1 %v1372_v15  ;;  %2814 = vmatprep.subr.mxu1 %v1519_v11 }
 0x8d4   :  { %v1369_v27 = vsel %vm151_vm1, %v1361_v14, 0.0  ;;  %2815 = vmatpush3.msra.mxu1 %v1519_v11 }
 0x8d5   :  { %1370 = vadd.xlane.f32.xlu0 %v1369_v27  ;;  %2816 = vmatprep.subr.mxu1 %v1518_v12 }
 0x8d6   :  { %2817 = vmatpush3.msra.mxu1 %v1518_v12 }
 0x95c   :  { %v1374_v16 = vpop.xlane.xlu1 %1373 }
 0x95d   :  { %v1376_v28 = vmul.f32 0.03125, %v1374_v16 }
 0x95e   :  { %v1371_v29 = vpop.xlane.xlu0 %1370 }
 0x95f   :  { %v3152_v17 = vsub.f32 %v1366_v26, %v1376_v28  ;;  %v1375_v18 = vmul.f32 0.03125, %v1371_v29  ;;  %v1517_v26 = vld [vmem:[#allocation2 + $0x1c8] sm:$0xff]  ;;  %v3012_v28 = vmov 0.0   ;;  %v1618_v29 = vld [vmem:[#allocation4 + $0x30] sm:$0xff] }
 0x960   :  { %2818 = vmatprep.subr.mxu1 %v1517_v26  ;;  %2823 = vmatprep.subr.mxu0 %v3012_v28 }
 0x961   :  { %v3154_v19 = vsub.f32 %v1361_v14, %v1375_v18  ;;  %v1380_v20 = vmul.f32 %v3152_v17, %v3152_v17  ;;  %2819 = vmatpush3.msra.mxu1 %v1517_v26  ;;  %v1616_v18 = vld [vmem:[#allocation4 + $0x20] sm:$0xff] }
 0x962   :  { %2867 = vmatprep.subr.mxu1 %v3012_v28 }
 0x963   :  { %v1384_v23 = vsel %vm151_vm1, %v1380_v20, 0.0  ;;  %v1379_v24 = vmul.f32 %v3154_v19, %v3154_v19  ;;  %v2442_v20 = vld [vmem:[#allocation2 + $0x24f] ss:$0 sm:$0xff] }
 0x964   :  { %1385 = vadd.xlane.f32.xlu1 %v1384_v23 }
 0x965   :  { %v1381_v25 = vsel %vm151_vm1, %v1379_v24, 0.0 }
 0x966   :  { %1382 = vadd.xlane.f32.xlu0 %v1381_v25 }
 0x9ed   :  { %v1386_v21 = vpop.xlane.xlu1 %1385 }
 0x9ee   :  { %v1388_v46 = vmul.f32 0.03125, %v1386_v21  ;;  %v1788_v21 = vld [vmem:[#allocation4 + $0x70] sm:$0xff] }
 0x9ef   :  { %v1383_v47 = vpop.xlane.xlu0 %1382 }
 0x9f0   :  { %v1390_v22 = vadd.f32 1e-05, %v1388_v46  ;;  %v1387_v48 = vmul.f32 0.03125, %v1383_v47  ;;  %v1787_v46 = vld [vmem:[#allocation4 + $0x68] sm:$0xff]  ;;  %v1786_v47 = vld [vmem:[#allocation4 + $0x60] sm:$0xff] }
 0x9f2   :  { %2940 = vrsqrt.f32 %v1390_v22  ;;  %v1389_v49 = vadd.f32 1e-05, %v1387_v48  ;;  %vm1400_vm6 = vcmp.eq.f32.partialorder %v1390_v22, inf  ;;  %v1403_v52 = vand.u32 2147483648, %v1390_v22  ;;  %v1867_v48 = vld [vmem:[#allocation4 + $0x90] sm:$0xff] }
 0x9f3   :  { %vm1402_vm7 = vcmp.eq.f32.partialorder %v1390_v22, 0.0 }
 0x9f4   :  { %2942 = vrsqrt.f32 %v1389_v49  ;;  %vm1393_vm8 = vcmp.eq.f32.partialorder %v1389_v49, inf  ;;  %v1396_v57 = vand.u32 2147483648, %v1389_v49  ;;  %vm1395_vm9 = vcmp.eq.f32.partialorder %v1389_v49, 0.0 }
 0x9ff   :  { %v2941_v50 = vpop.eup %2940 }
 0xa00   :  { %v1399_v51 = vmul.f32 %v2941_v50, %v1390_v22  ;;  %v1865_v50 = vld [vmem:[#allocation4 + $0x80] sm:$0xff] }
 0xa01   :  { %v2943_v53 = vpop.eup %2942 }
 0xa02   :  { %v1401_v54 = vsel %vm1400_vm6, %v1390_v22, %v1399_v51  ;;  %v1392_v56 = vmul.f32 %v2943_v53, %v1389_v49  ;;  %v1785_v22 = vld [vmem:[#allocation4 + $0x58] sm:$0xff]  ;;  %v1945_v53 = vld [vmem:[#allocation4 + $0x108] sm:$0xff] }
 0xa03   :  { %v1404_v55 = vsel %vm1402_vm7, %v1403_v52, %v1401_v54  ;;  %v1864_v51 = vld [vmem:[#allocation4 + $0x78] sm:$0xff]  ;;  %v1946_v52 = vld [vmem:[#allocation4 + $0x110] sm:$0xff]  ;;  %v1944_v54 = vld [vmem:[#allocation4 + $0x100] sm:$0xff] }
 0xa04   :  { %2944 = vrcp.f32 %v1404_v55  ;;  %v1394_v58 = vsel %vm1393_vm8, %v1389_v49, %v1392_v56  ;;  %v1866_v49 = vld [vmem:[#allocation4 + $0x88] sm:$0xff]  ;;  %v1943_v55 = vld [vmem:[#allocation4 + $0xf8] sm:$0xff]  ;;  %v3014_v56 = vmov 1966171168  }
 0xa05   :  { %v1397_v59 = vsel %vm1395_vm9, %v1396_v57, %v1394_v58  ;;  %v1949_v57 = vunpack.c.l.s4 %v3014_v56  ;;  %v1951_v58 = vlaneseq }
 0xa06   :  { %2946 = vrcp.f32 %v1397_v59 }
 0xa07   :  { %v1950_v59 = vunpack.c.0.s8 %v1949_v57  ;;  %vm2136_vm14 = vcmp.lt.s32.totalorder %v1951_v58, 32 }
 0xa11   :  { %v2945_v60 = vpop.eup %2944 }
 0xa12   :  { %v1408_v0 = vmul.f32 %v2945_v60, %v3152_v17  ;;  %v1617_v17 = vld [vmem:[#allocation4 + $0x28] sm:$0xff]  ;;  %v1952_v60 = vshrl.u32 %v1951_v58, 7 }
 0xa13   :  { %v2947_v1 = vpop.eup %2946 }
 0xa14   :  { %v1415_v2 = vmul.f32 %v2437_v63, %v1408_v0  ;;  %v1406_v3 = vmul.f32 %v2947_v1, %v3154_v19  ;;  %v1615_v19 = vld [vmem:[#allocation4 + $0x18] sm:$0xff] }
 0xa16   :  { %v1414_v5 = vmul.f32 %v2437_v63, %v1406_v3  ;;  %v1422_v6 = vadd.f32 %v2438_v4, %v1415_v2  ;;  %v2445_v63 = vld [vmem:[#allocation4 + $0x11a] ss:$0 sm:$0xff]  ;;  %v3213_v3 = vsub.s32 %v1950_v59, %v1952_v60 }
 0xa18   :  { %v1421_v7 = vadd.f32 %v2438_v4, %v1414_v5  ;;  %v1424_v9 = vadd.f32 %v1422_v6, %v3114_v62  ;;  %v2447_v4 = vld [vmem:[#allocation4 + $0x11b] ss:$0 sm:$0xff] }
 0xa1a   :  { %v1423_v8 = vadd.f32 %v1421_v7, %v3112_v61 }
 0xa1c   :  { %2785 = vmatprep.mubr.msk.f32.mxu0 %vm151_vm1, %v1423_v8 }
 0xa1d   :  { %2786 = vmatmul.mubr.msk.f32.vlgmr.msra.gmra.mxu0 %vm151_vm1, %v1424_v9 }
 0xa1e   :  { %2824 = vmatpush3.msra.mxu0 %v1618_v29  ;;  %2831 = vmatprep.mubr.msk.f32.mxu0 %vm3013_vm10, %v3012_v28 }
 0xa1f   :  { %2825 = vmatprep.subr.mxu0 %v3012_v28 }
 0xa20   :  { %2826 = vmatpush3.msra.mxu0 %v1617_v17 }
 0xa21   :  { %2827 = vmatprep.subr.mxu0 %v3012_v28 }
 0xa22   :  { %2828 = vmatpush3.msra.mxu0 %v1616_v18 }
 0xa23   :  { %2829 = vmatprep.subr.mxu0 %v3012_v28 }
 0xa24   :  { %2830 = vmatpush3.msra.mxu0 %v1615_v19 }
 0xa25   :  { %2834 = vmatprep.subr.mxu0 %v3012_v28 }
 0xadd   :  { %v2787_v61 = vpop.f32.mrf.mxu0 }
 0xade   :  { %v1512_v14 = vadd.f32 %v2787_v61, %v2439_v13 }
 0xadf   :  { %v1506_v62 = vpop.f32.mrf.mxu0 }
 0xae0   :  { %v1507_v15 = vadd.f32 %v2439_v13, %v1506_v62  ;;  %v1516_v16 = vmax.f32 %v1512_v14, 0.0 }
 0xae2   :  { %v1515_v27 = vmax.f32 %v1507_v15, 0.0 }
 0xae4   :  { %2820 = vmatprep.mubr.f32.mxu1 %v1515_v27 }
 0xae5   :  { %2821 = vmatmul.mubr.f32.vlgmr.msra.gmra.mxu1 %v1516_v16 }
 0xae6   :  { %2875 = vmatprep.mubr.msk.f32.mxu1 %vm3013_vm10, %v3012_v28  ;;  %2868 = vmatpush3.msra.mxu1 %v1946_v52 }
 0xae7   :  { %2869 = vmatprep.subr.mxu1 %v3012_v28 }
 0xae8   :  { %2870 = vmatpush3.msra.mxu1 %v1945_v53 }
 0xae9   :  { %2871 = vmatprep.subr.mxu1 %v3012_v28 }
 0xaea   :  { %2872 = vmatpush3.msra.mxu1 %v1944_v54 }
 0xaeb   :  { %2873 = vmatprep.subr.mxu1 %v3012_v28 }
 0xaec   :  { %2874 = vmatpush3.msra.mxu1 %v1943_v55 }
 0xaed   :  { %2889 = vmatprep.subr.mxu1 %v3012_v28 }
 0xba5   :  { %v2822_v23 = vpop.f32.mrf.mxu1 }
 0xba6   :  { %v1610_v24 = vadd.f32 %v2822_v23, %v2442_v20 }
 0xba7   :  { %v1604_v25 = vpop.f32.mrf.mxu1 }
 0xba8   :  { %v1614_v30 = vadd.f32 %v1610_v24, %v1424_v9  ;;  %v1605_v31 = vadd.f32 %v2442_v20, %v1604_v25  ;;  %v2195_v25 = vld [vmem:[#allocation4 + $0xb0] sm:$0xff] }
 0xbaa   :  { %v2378_v32 = vrot.slane %v1614_v30, 7  ;;  %v1613_v33 = vadd.f32 %v1605_v31, %v1423_v8  ;;  %v1627_v34 = vrot.slane %v1614_v30, 6  ;;  %v2194_v30 = vld [vmem:[#allocation4 + $0xa8] sm:$0xff]  ;;  %v2193_v31 = vld [vmem:[#allocation4 + $0xa0] sm:$0xff] }
 0xbac   :  { %2383 = vst.msk [vmem:[%s3255_s3 + $0x1] sm:$0x1] %vm2156_vm11, %v2378_v32  ;;  %v1626_v35 = vrot.slane %v1613_v33, 7  ;;  %v2192_v32 = vld [vmem:[#allocation4 + $0x98] sm:$0xff] }
 0xbad   :  { %2382 = vst.msk [vmem:[%s3255_s3 - $0x7] sm:$0x80] %vm2381_vm12, %v1613_v33  ;;  %v2293_v33 = vld [vmem:[#allocation4 + $0xd0] sm:$0xff] }
 0xbae   :  { %v1629_v37 = vsel %vm1628_vm13, %v1627_v34, %v1626_v35  ;;  %v2292_v34 = vld [vmem:[#allocation4 + $0xc8] sm:$0xff] }
 0xbaf   :  { %2832 = vmatmul.mubr.msk.f32.vlgmr.msra.gmra.mxu0 %vm151_vm1, %v1629_v37 }
 0xbb0   :  { %2835 = vmatpush3.msra.mxu0 %v1706_v36  ;;  %2842 = vmatprep.mubr.msk.f32.mxu0 %vm3013_vm10, %v3012_v28 }
 0xbb1   :  { %2836 = vmatprep.subr.mxu0 %v3012_v28 }
 0xbb2   :  { %2837 = vmatpush3.msra.mxu0 %v1705_v38 }
 0xbb3   :  { %2838 = vmatprep.subr.mxu0 %v3012_v28 }
 0xbb4   :  { %2839 = vmatpush3.msra.mxu0 %v1704_v39 }
 0xbb5   :  { %2840 = vmatprep.subr.mxu0 %v3012_v28 }
 0xbb6   :  { %2841 = vmatpush3.msra.mxu0 %v1703_v40 }
 0xbb7   :  { %2845 = vmatprep.subr.mxu0 %v3012_v28 }
 0xc6f   :  { %v1698_v42 = vpop.f32.mrf.mxu0 }
 0xc70   :  { %v1699_v43 = vadd.f32 %v2443_v41, %v1698_v42 }
 0xc71   :  { %v2833_v44 = vpop.f32.mrf.mxu0 }
 0xc72   :  { %v1702_v45 = vmax.f32 %v1699_v43, 0.0 }
 0xc74   :  { %2843 = vmatmul.mubr.msk.f32.vlgmr.msra.gmra.mxu0 %vm151_vm1, %v1702_v45 }
 0xc75   :  { %2846 = vmatpush3.msra.mxu0 %v1788_v21  ;;  %2853 = vmatprep.mubr.msk.f32.mxu0 %vm3013_vm10, %v3012_v28 }
 0xc76   :  { %2847 = vmatprep.subr.mxu0 %v3012_v28 }
 0xc77   :  { %2848 = vmatpush3.msra.mxu0 %v1787_v46 }
 0xc78   :  { %2849 = vmatprep.subr.mxu0 %v3012_v28 }
 0xc79   :  { %2850 = vmatpush3.msra.mxu0 %v1786_v47 }
 0xc7a   :  { %2851 = vmatprep.subr.mxu0 %v3012_v28 }
 0xc7b   :  { %2852 = vmatpush3.msra.mxu0 %v1785_v22 }
 0xc7c   :  { %2854 = vmatmul.mubr.msk.f32.vlgmr.msra.gmra.mxu0 %vm151_vm1, %v1702_v45  ;;  %2856 = vmatprep.subr.mxu0 %v3012_v28 }
 0xc7d   :  { %2857 = vmatpush3.msra.mxu0 %v1867_v48  ;;  %2864 = vmatprep.mubr.msk.f32.mxu0 %vm3013_vm10, %v3012_v28 }
 0xc7e   :  { %2858 = vmatprep.subr.mxu0 %v3012_v28 }
 0xc7f   :  { %2859 = vmatpush3.msra.mxu0 %v1866_v49 }
 0xc80   :  { %2860 = vmatprep.subr.mxu0 %v3012_v28 }
 0xc81   :  { %2861 = vmatpush3.msra.mxu0 %v1865_v50 }
 0xc82   :  { %2862 = vmatprep.subr.mxu0 %v3012_v28 }
 0xc83   :  { %2863 = vmatpush3.msra.mxu0 %v1864_v51 }
 0xc84   :  { %2865 = vmatmul.mubr.msk.f32.vlgmr.msra.gmra.mxu0 %vm151_vm1, %v1702_v45  ;;  %2878 = vmatprep.subr.mxu0 %v3012_v28 }
 0xc85   :  { %2886 = vmatprep.mubr.msk.f32.mxu0 %vm3013_vm10, %v3012_v28  ;;  %2879 = vmatpush3.msra.mxu0 %v2195_v25  ;;  %v2291_v25 = vld [vmem:[#allocation4 + $0xc0] sm:$0xff] }
 0xc86   :  { %2880 = vmatprep.subr.mxu0 %v3012_v28 }
 0xc87   :  { %2881 = vmatpush3.msra.mxu0 %v2194_v30  ;;  %v2290_v30 = vld [vmem:[#allocation4 + $0xb8] sm:$0xff] }
 0xc88   :  { %2882 = vmatprep.subr.mxu0 %v3012_v28 }
 0xc89   :  { %2883 = vmatpush3.msra.mxu0 %v2193_v31  ;;  %v2452_v31 = vld [vmem:[#allocation4 + $0x11d] ss:$0 sm:$0xff] }
 0xc8a   :  { %2884 = vmatprep.subr.mxu0 %v3012_v28 }
 0xc8b   :  { %2885 = vmatpush3.msra.mxu0 %v2192_v32 }
 0xd34   :  { %v1781_v0 = vpop.f32.mrf.mxu0 }
 0xd35   :  { %v1782_v2 = vadd.f32 %v2445_v63, %v1781_v0 }
 0xd36   :  { %v2844_v1 = vpop.f32.mrf.mxu0 }
 0xd37   :  { %v1954_v5 = vrot.slane %v1782_v2, %v3213_v3 }
 0xd39   :  { %v1955_v9 = vcombine.high %v1954_v5, %v1954_v5  ;;  %v1962_v26 = vrot.slane %v1954_v5, %v3213_v3 }
 0xd3b   :  { %v1969_v13 = vrot.slane %v1955_v9, %v3213_v3 }
 0xd3c   :  { %v1860_v6 = vpop.f32.mrf.mxu0 }
 0xd3d   :  { %v1861_v7 = vadd.f32 %v2447_v4, %v1860_v6  ;;  %v2449_v6 = vld [vmem:[#allocation4 + $0x11c] ss:$0 sm:$0xff] }
 0xd3e   :  { %v2855_v8 = vpop.f32.mrf.mxu0 }
 0xd3f   :  { %v1979_v10 = vrot.slane %v1861_v7, %v3213_v3 }
 0xd41   :  { %v1980_v11 = vcombine.high %v1979_v10, %v1979_v10  ;;  %v1987_v12 = vrot.slane %v1979_v10, %v3213_v3 }
 0xd43   :  { %v1994_v61 = vrot.slane %v1980_v11, %v3213_v3  ;;  %v1997_v62 = vmul.f32 %v1987_v12, %v1962_v26  ;;  %v1999_v27 = vmul.f32 %v1987_v12, %v1969_v13 }
 0xd44   :  { %v3221_v14 = vpop.f32.mrf.mxu0 }
 0xd45   :  { %v1998_v15 = vmul.f32 %v1994_v61, %v1962_v26  ;;  %v2000_v16 = vmul.f32 %v1994_v61, %v1969_v13  ;;  %v1940_v9 = vadd.f32 %v2449_v6, %v3221_v14 }
 0xd46   :  { %v2866_v29 = vpop.f32.mrf.mxu0 }
 0xd47   :  { %v2005_v17 = vcombine.low %v1997_v62, %v1998_v15  ;;  %v2006_v18 = vcombine.low %v1999_v27, %v2000_v16  ;;  %v2178_v10 = vrot.slane %v1940_v9, %v3213_v3 }
 0xd49   :  { %v2013_v19 = vrot.slane %v2005_v17, %v3213_v3  ;;  %v2020_v20 = vrot.slane %v2006_v18, %v3213_v3  ;;  %v2179_v11 = vcombine.high %v2178_v10, %v2178_v10 }
 0xd4b   :  { %v2021_v23 = vcombine.low %v2013_v19, %v2020_v20  ;;  %v2186_v26 = vrot.slane %v2179_v11, %v3213_v3 }
 0xd4d   :  { %v2028_v24 = vrot.slane %v2021_v23, %v3213_v3 }
 0xd4f   :  { %2876 = vmatmul.mubr.msk.f32.vlgmr.msra.gmra.mxu1 %vm151_vm1, %v2028_v24 }
 0xd50   :  { %2897 = vmatprep.mubr.msk.f32.mxu1 %vm3013_vm10, %v3012_v28  ;;  %2890 = vmatpush3.msra.mxu1 %v2293_v33 }
 0xd51   :  { %2891 = vmatprep.subr.mxu1 %v3012_v28 }
 0xd52   :  { %2892 = vmatpush3.msra.mxu1 %v2292_v34 }
 0xd53   :  { %2893 = vmatprep.subr.mxu1 %v3012_v28 }
 0xd54   :  { %2894 = vmatpush3.msra.mxu1 %v2291_v25 }
 0xd55   :  { %2895 = vmatprep.subr.mxu1 %v3012_v28 }
 0xd56   :  { %2896 = vmatpush3.msra.mxu1 %v2290_v30 }
 0xe0f   :  { %v2097_v35 = vpop.f32.mrf.mxu1 }
 0xe10   :  { %v2108_v36 = vrot.slane %v2097_v35, %v3213_v3  ;;  %v2454_v35 = vld [vmem:[#allocation4 + $0x11e] ss:$0 sm:$0xff] }
 0xe11   :  { %v2877_v37 = vpop.f32.mrf.mxu1 }
 0xe12   :  { %v2109_v38 = vcombine.high %v2108_v36, %v2108_v36  ;;  %v2116_v39 = vrot.slane %v2108_v36, %v3213_v3 }
 0xe14   :  { %v2123_v40 = vrot.slane %v2109_v38, %v3213_v3  ;;  %v2124_v41 = vcombine.high %v2116_v39, %v2116_v39  ;;  %v2130_v42 = vmul.f32 0.35355338, %v2116_v39 }
 0xe16   :  { %v2125_v43 = vcombine.high %v2123_v40, %v2123_v40  ;;  %v2131_v44 = vmul.f32 0.35355338, %v2123_v40  ;;  %v2132_v45 = vmul.f32 0.35355338, %v2124_v41  ;;  %v2138_v46 = vsel %vm2136_vm14, %v2130_v42, -inf }
 0xe18   :  { %v2133_v21 = vmul.f32 0.35355338, %v2125_v43  ;;  %v2139_v47 = vsel %vm2136_vm14, %v2131_v44, -inf  ;;  %v2141_v48 = vsel %vm2136_vm14, %v2132_v45, -inf }
 0xe19   :  { %v2140_v22 = vmax.f32 %v2138_v46, %v2139_v47 }
 0xe1a   :  { %v2142_v49 = vsel %vm2136_vm14, %v2133_v21, -inf }
 0xe1b   :  { %v2143_v50 = vmax.f32 %v2141_v48, %v2142_v49  ;;  %v2144_v51 = vsub.f32 %v2130_v42, %v2140_v22  ;;  %v2145_v52 = vsub.f32 %v2131_v44, %v2140_v22 }
 0xe1d   :  { %v2146_v53 = vsub.f32 %v2132_v45, %v2143_v50  ;;  %v2147_v54 = vsub.f32 %v2133_v21, %v2143_v50  ;;  %v2148_v55 = vmul.f32 1.442695, %v2144_v51  ;;  %v2150_v56 = vmul.f32 1.442695, %v2145_v52 }
 0xe1f   :  { %2948 = vpow2.f32 %v2148_v55  ;;  %v2152_v57 = vmul.f32 1.442695, %v2146_v53  ;;  %v2154_v59 = vmul.f32 1.442695, %v2147_v54 }
 0xe20   :  { %2950 = vpow2.f32 %v2150_v56 }
 0xe21   :  { %2952 = vpow2.f32 %v2152_v57 }
 0xe22   :  { %2954 = vpow2.f32 %v2154_v59 }
 0xe2c   :  { %v2949_v58 = vpop.eup %2948 }
 0xe2d   :  { %v2951_v60 = vpop.eup %2950  ;;  %v2157_v63 = vsel %vm2156_vm11, %v2949_v58, 0.0 }
 0xe2e   :  { %v2953_v0 = vpop.eup %2952  ;;  %v2158_v1 = vsel %vm2156_vm11, %v2951_v60, 0.0 }
 0xe2f   :  { %v2955_v2 = vpop.eup %2954  ;;  %v2159_v4 = vadd.f32 %v2158_v1, %v2157_v63  ;;  %v2160_v5 = vsel %vm2156_vm11, %v2953_v0, 0.0 }
 0xe30   :  { %v2161_v7 = vsel %vm2156_vm11, %v2955_v2, 0.0 }
 0xe31   :  { %v2162_v8 = vadd.f32 %v2161_v7, %v2160_v5  ;;  %2956 = vrcp.f32 %v2159_v4 }
 0xe33   :  { %2958 = vrcp.f32 %v2162_v8 }
 0xe3e   :  { %v2957_v12 = vpop.eup %2956 }
 0xe3f   :  { %v2164_v13 = vmul.f32 %v2957_v12, %v2949_v58  ;;  %v2165_v61 = vmul.f32 %v2957_v12, %v2951_v60 }
 0xe40   :  { %v2959_v62 = vpop.eup %2958 }
 0xe41   :  { %v2167_v15 = vmul.f32 %v2959_v62, %v2953_v0  ;;  %v2168_v27 = vmul.f32 %v2959_v62, %v2955_v2  ;;  %v2169_v16 = vmul.f32 %v2164_v13, %v1940_v9  ;;  %v2188_v29 = vmul.f32 %v2186_v26, %v2165_v61 }
 0xe43   :  { %v2170_v17 = vmul.f32 %v2167_v15, %v1940_v9  ;;  %v2189_v18 = vmul.f32 %v2186_v26, %v2168_v27  ;;  %v2190_v19 = vadd.f32 %v2188_v29, %v2169_v16 }
 0xe45   :  { %v2191_v20 = vadd.f32 %v2189_v18, %v2170_v17 }
 0xe47   :  { %v2203_v23 = vcombine.low %v2190_v19, %v2191_v20 }
 0xe49   :  { %v2210_v14 = vrot.slane %v2203_v23, %v3213_v3 }
 0xe4b   :  { %v2217_v24 = vrot.slane %v2210_v14, %v3213_v3 }
 0xe4d   :  { %2887 = vmatmul.mubr.msk.f32.vlgmr.msra.gmra.mxu0 %vm151_vm1, %v2217_v24 }
 0xf0d   :  { %v2286_v32 = vpop.f32.mrf.mxu0 }
 0xf0e   :  { %v2287_v33 = vadd.f32 %v2452_v31, %v2286_v32 }
 0xf0f   :  { %v2888_v34 = vpop.f32.mrf.mxu0 }
 0xf10   :  { %2898 = vmatmul.mubr.msk.f32.vlgmr.msra.gmra.mxu1 %vm151_vm1, %v2287_v33 }
 0xfd0   :  { %v2368_v36 = vpop.f32.mrf.mxu1 }
 0xfd1   :  { %v2369_v37 = vadd.f32 %v2454_v35, %v2368_v36 }
 0xfd2   :  { %v2899_v38 = vpop.f32.mrf.mxu1 }
 0xfd3   :  { %v2456_v39 = vmul.f32 -1.442695, %v2369_v37 }
 0xfd5   :  { %2960 = vpow2.f32 %v2456_v39 }
 0xfe2   :  { %v2961_v3 = vpop.eup %2960 }
 0xfe3   :  { %v2375_v40 = vadd.f32 1.0, %v2961_v3 }
 0xfe5   :  { %2962 = vrcp.f32 %v2375_v40 }
 0xff2   :  { %v2963_v41 = vpop.eup %2962 }
 0xff3   :  { %2385 = vrot.lane.b32.xlu0 %v2963_v41, %s3015_s29 }
0x1065   :  { %v2386_v28 = vpop.permute.xlu0 %2385 }
0x1066   :  { %2389 = vst.msk [vmem:[%s3255_s3] sm:$0x3] %vm2388_vm15, %v2386_v28 }
0x1067   :  { %2394 = vsyncpa [#allocation3], 1 }
0x1068   :  { %2395 = vsyncpa [#allocation5], 1 }

</bundles_post_ra>
